<compile_context>
chip_gen: v7x
topology: tpu7x:2x2x1
jax: 0.10.0
libtpu: 0.0.40
codegen_flags: <defaults>
</compile_context>

<pallas_src>
import functools

import jax
import jax.numpy as jnp
from jax.experimental import pallas as pl
from jax.experimental.pallas import tpu as pltpu

_SEG = 32  # lanes per (batch, plane) segment in the packed slab


# ----------------------------- Pallas kernel --------------------------------

def _spatial_attention_kernel(x_ref, w_ref, o_ref, slab_ref, *, B, H, W, K):
    """Fused SpatialAttention (pooling + KxK conv + sigmoid) in one step.

    x_ref   : (B, H, W, C)  VMEM  NHWC activations (channels on lanes)
    w_ref   : (K*K, 128)    VMEM  per-tap weight rows; lane l of row t=ky*K+kx
                                  holds w[(l // 32) % 2, ky, kx]
    o_ref   : (B, H, W)     VMEM  sigmoid attention mask
    slab_ref: (H+K-1, 128)  VMEM  lane-packed, zero-padded avg/max planes;
                                  segment s = 2*b + c (c=0 avg, c=1 max)
    """
    P = K // 2

    # ---- 1) channel pooling, written into the packed padded slab ------------
    slab_ref[...] = jnp.zeros_like(slab_ref)      # zeroed once (single step)
    for b in range(B):                            # per-batch to limit vreg live
        xb = x_ref[b].astype(jnp.float32)         # (H, W, C)
        avg = jnp.mean(xb, axis=-1)               # (H, W), W on lanes
        mx = jnp.max(xb, axis=-1)                 # (H, W)
        a0 = (2 * b + 0) * _SEG + P               # avg segment interior offset
        m0 = (2 * b + 1) * _SEG + P               # max segment interior offset
        slab_ref[P:P + H, a0:a0 + W] = avg
        slab_ref[P:P + H, m0:m0 + W] = mx

    slab = slab_ref[...]                          # (H+K-1, 128), all planes

    # ---- 2) KxK conv: kx lane-shift hoisted, full-width FMAs ----------------
    acc = jnp.zeros((H, 128), jnp.float32)
    for kx in range(K):
        if kx == 0:
            shifted = slab
        else:
            # shifted[:, l] = slab[:, l + kx]; wrapped tail lanes land only in
            # lanes that are never read out (each segment's lanes >= W).
            shifted = jnp.concatenate([slab[:, kx:], slab[:, :kx]], axis=1)
        for ky in range(K):
            wrow = w_ref[ky * K + kx, :]          # (128,) per-segment weights
            acc = acc + wrow * shifted[ky:ky + H, :]

    # ---- 3) sum avg/max plane contributions per batch, sigmoid, store -------
    for b in range(B):
        base = 2 * b * _SEG
        yb = acc[:, base:base + _SEG] + acc[:, base + _SEG:base + 2 * _SEG]
        yb = yb[:, :W]                            # (H, W) valid lanes
        o_ref[b] = 1.0 / (1.0 + jnp.exp(-yb))     # exact sigmoid (EUP exp)


# ----------------------------- wrapper ---------------------------------------

def spatial_attention(x, w):
    """x: (B, H, W, C) NHWC activations; w: (2, K, K) conv taps.

    Returns the (B, H, W, 1) sigmoid spatial-attention mask
    (== PyTorch output of shape (B, 1, H, W) in NHWC layout).
    """
    B, H, W, C = x.shape
    K = w.shape[-1]
    assert K % 2 == 1, "padding = K//2 layout assumes an odd kernel size"
    assert W + (K - 1) <= _SEG, "padded plane must fit a 32-lane segment"
    assert 2 * B * _SEG <= 128, "lane-packed layout supports B <= 2 per call"

    # Per-tap weight rows: lane l of row t = ky*K + kx holds w[plane(l), ky, kx]
    # with plane(l) = (l // 32) % 2 (avg / max).  Tiny weight-only preprocessing.
    plane_of_lane = (jnp.arange(128) // _SEG) % 2                    # (128,)
    w_tab = w.reshape(2, K * K).astype(jnp.float32)[plane_of_lane].T  # (K*K,128)

    out = pl.pallas_call(
        functools.partial(_spatial_attention_kernel, B=B, H=H, W=W, K=K),
        out_shape=jax.ShapeDtypeStruct((B, H, W), jnp.float32),
        in_specs=[
            pl.BlockSpec(memory_space=pltpu.MemorySpace.VMEM),   # x (whole)
            pl.BlockSpec(memory_space=pltpu.MemorySpace.VMEM),   # weight table
        ],
        out_specs=pl.BlockSpec(memory_space=pltpu.MemorySpace.VMEM),
        scratch_shapes=[pltpu.VMEM((H + K - 1, 128), jnp.float32)],
    )(x, w_tab)
    return out.reshape(B, H, W, 1)                # free metadata reshape


# ----------------------------- pure-JAX reference ----------------------------

def spatial_attention_ref(x, w):
    """Reference with XLA ops (same math as the PyTorch module, NHWC layout)."""
    avg = jnp.mean(x, axis=-1, keepdims=True)
    mx = jnp.max(x, axis=-1, keepdims=True)
    feat = jnp.concatenate([avg, mx], axis=-1)            # (B, H, W, 2)
    w_hwio = jnp.transpose(w, (1, 2, 0))[..., None]       # (K, K, 2, 1)
    y = jax.lax.conv_general_dilated(
        feat, w_hwio, window_strides=(1, 1), padding="SAME",
        dimension_numbers=("NHWC", "HWIO", "NHWC"),
        precision=jax.lax.Precision.HIGHEST)
    return 1.0 / (1.0 + jnp.exp(-y))                      # (B, H, W, 1)


# ----------------------------- main -------------------------------------------

if __name__ == "__main__":
    key = jax.random.PRNGKey(0)
    kx_, kw_ = jax.random.split(key)
    B, C, H, W, K = 2, 64, 16, 16, 7

    # NHWC input; the equivalent PyTorch NCHW input is x.transpose(0, 3, 1, 2)
    # of shape (B, C, H, W) = (2, 64, 16, 16).
    x = jax.random.normal(kx_, (B, H, W, C), jnp.float32)
    w = 0.1 * jax.random.normal(kw_, (2, K, K), jnp.float32)   # conv1.weight[0]

    out = jax.jit(spatial_attention)(x, w)
    out = jax.block_until_ready(out)
    assert out.shape == (B, H, W, 1), out.shape

    ref = spatial_attention_ref(x, w)
    max_err = float(jnp.max(jnp.abs(out - ref)))
    assert max_err < 1e-4, f"mismatch vs reference: {max_err}"
    assert bool(jnp.all(jnp.isfinite(out)))
    print("KERNEL_OK")
</pallas_src>

<mosaic_0001>
module attributes {stable_mosaic.version = 11 : i64} {
  func.func @_spatial_attention_kernel(%arg0: memref<2x16x16x64xf32, #tpu.memory_space<vmem>>, %arg1: memref<49x128xf32, #tpu.memory_space<vmem>>, %arg2: memref<2x16x16xf32, #tpu.memory_space<vmem>>, %arg3: memref<22x128xf32, #tpu.memory_space<vmem>>) attributes {dimension_semantics = [], scalar_prefetch = 0 : i64, scratch_operands = 1 : i64, tpu.core_type = #tpu.core_type<tc>} {
    %cst = arith.constant 0.000000e+00 : f32
    %0 = vector.broadcast %cst : f32 to vector<22x128xf32>
    %c0 = arith.constant 0 : index
    %c0_0 = arith.constant 0 : index
    %1 = vector.load %arg3[%c0, %c0_0] : memref<22x128xf32, #tpu.memory_space<vmem>>, vector<22x128xf32>
    tpu.vector_store %arg3[%c0, %c0_0], %0 {strides = array<i32>} : memref<22x128xf32, #tpu.memory_space<vmem>>, vector<22x128xf32>,
    %c0_1 = arith.constant 0 : index
    %c0_2 = arith.constant 0 : index
    %c0_3 = arith.constant 0 : index
    %c0_4 = arith.constant 0 : index
    %2 = vector.load %arg0[%c0_1, %c0_2, %c0_3, %c0_4] : memref<2x16x16x64xf32, #tpu.memory_space<vmem>>, vector<1x16x16x64xf32>
    %3 = vector.shape_cast %2 : vector<1x16x16x64xf32> to vector<16x16x64xf32>
    %cst_5 = arith.constant dense<0.000000e+00> : vector<16x16xf32>
    %4 = vector.multi_reduction <add>, %3, %cst_5 [2] : vector<16x16x64xf32> to vector<16x16xf32>
    %cst_6 = arith.constant 6.400000e+01 : f32
    %5 = vector.broadcast %cst_6 : f32 to vector<16x16xf32>
    %6 = arith.divf %4, %5 : vector<16x16xf32>
    %cst_7 = arith.constant dense<0xFF800000> : vector<16x16xf32>
    %7 = vector.multi_reduction <maximumf>, %3, %cst_7 [2] : vector<16x16x64xf32> to vector<16x16xf32>
    %c3 = arith.constant 3 : index
    %c3_8 = arith.constant 3 : index
    %8 = vector.load %arg3[%c3, %c3_8] : memref<22x128xf32, #tpu.memory_space<vmem>>, vector<16x16xf32>
    tpu.vector_store %arg3[%c3, %c3_8], %6 {strides = array<i32>} : memref<22x128xf32, #tpu.memory_space<vmem>>, vector<16x16xf32>,
    %c3_9 = arith.constant 3 : index
    %c35 = arith.constant 35 : index
    %9 = vector.load %arg3[%c3_9, %c35] : memref<22x128xf32, #tpu.memory_space<vmem>>, vector<16x16xf32>
    tpu.vector_store %arg3[%c3_9, %c35], %7 {strides = array<i32>} : memref<22x128xf32, #tpu.memory_space<vmem>>, vector<16x16xf32>,
    %c1 = arith.constant 1 : index
    %c0_10 = arith.constant 0 : index
    %c0_11 = arith.constant 0 : index
    %c0_12 = arith.constant 0 : index
    %10 = vector.load %arg0[%c1, %c0_10, %c0_11, %c0_12] : memref<2x16x16x64xf32, #tpu.memory_space<vmem>>, vector<1x16x16x64xf32>
    %11 = vector.shape_cast %10 : vector<1x16x16x64xf32> to vector<16x16x64xf32>
    %cst_13 = arith.constant dense<0.000000e+00> : vector<16x16xf32>
    %12 = vector.multi_reduction <add>, %11, %cst_13 [2] : vector<16x16x64xf32> to vector<16x16xf32>
    %cst_14 = arith.constant 6.400000e+01 : f32
    %13 = vector.broadcast %cst_14 : f32 to vector<16x16xf32>
    %14 = arith.divf %12, %13 : vector<16x16xf32>
    %cst_15 = arith.constant dense<0xFF800000> : vector<16x16xf32>
    %15 = vector.multi_reduction <maximumf>, %11, %cst_15 [2] : vector<16x16x64xf32> to vector<16x16xf32>
    %c3_16 = arith.constant 3 : index
    %c67 = arith.constant 67 : index
    %16 = vector.load %arg3[%c3_16, %c67] : memref<22x128xf32, #tpu.memory_space<vmem>>, vector<16x16xf32>
    tpu.vector_store %arg3[%c3_16, %c67], %14 {strides = array<i32>} : memref<22x128xf32, #tpu.memory_space<vmem>>, vector<16x16xf32>,
    %c3_17 = arith.constant 3 : index
    %c99 = arith.constant 99 : index
    %17 = vector.load %arg3[%c3_17, %c99] : memref<22x128xf32, #tpu.memory_space<vmem>>, vector<16x16xf32>
    tpu.vector_store %arg3[%c3_17, %c99], %15 {strides = array<i32>} : memref<22x128xf32, #tpu.memory_space<vmem>>, vector<16x16xf32>,
    %c0_18 = arith.constant 0 : index
    %c0_19 = arith.constant 0 : index
    %18 = vector.load %arg3[%c0_18, %c0_19] : memref<22x128xf32, #tpu.memory_space<vmem>>, vector<22x128xf32>
    %cst_20 = arith.constant 0.000000e+00 : f32
    %19 = vector.broadcast %cst_20 : f32 to vector<16x128xf32>
    %c0_21 = arith.constant 0 : index
    %c0_22 = arith.constant 0 : index
    %20 = vector.load %arg1[%c0_21, %c0_22] : memref<49x128xf32, #tpu.memory_space<vmem>>, vector<1x128xf32>
    %21 = vector.shape_cast %20 : vector<1x128xf32> to vector<128xf32>
    %22 = vector.extract_strided_slice %18 {offsets = [0, 0], sizes = [16, 128], strides = [1, 1]} : vector<22x128xf32> to vector<16x128xf32>
    %23 = vector.shape_cast %21 : vector<128xf32> to vector<1x128xf32>
    %24 = vector.broadcast %23 : vector<1x128xf32> to vector<16x128xf32>
    %25 = arith.mulf %24, %22 : vector<16x128xf32>
    %26 = arith.addf %19, %25 : vector<16x128xf32>
    %c7 = arith.constant 7 : index
    %c0_23 = arith.constant 0 : index
    %27 = vector.load %arg1[%c7, %c0_23] : memref<49x128xf32, #tpu.memory_space<vmem>>, vector<1x128xf32>
    %28 = vector.shape_cast %27 : vector<1x128xf32> to vector<128xf32>
    %29 = vector.extract_strided_slice %18 {offsets = [1, 0], sizes = [16, 128], strides = [1, 1]} : vector<22x128xf32> to vector<16x128xf32>
    %30 = vector.shape_cast %28 : vector<128xf32> to vector<1x128xf32>
    %31 = vector.broadcast %30 : vector<1x128xf32> to vector<16x128xf32>
    %32 = arith.mulf %31, %29 : vector<16x128xf32>
    %33 = arith.addf %26, %32 : vector<16x128xf32>
    %c14 = arith.constant 14 : index
    %c0_24 = arith.constant 0 : index
    %34 = vector.load %arg1[%c14, %c0_24] : memref<49x128xf32, #tpu.memory_space<vmem>>, vector<1x128xf32>
    %35 = vector.shape_cast %34 : vector<1x128xf32> to vector<128xf32>
    %36 = vector.extract_strided_slice %18 {offsets = [2, 0], sizes = [16, 128], strides = [1, 1]} : vector<22x128xf32> to vector<16x128xf32>
    %37 = vector.shape_cast %35 : vector<128xf32> to vector<1x128xf32>
    %38 = vector.broadcast %37 : vector<1x128xf32> to vector<16x128xf32>
    %39 = arith.mulf %38, %36 : vector<16x128xf32>
    %40 = arith.addf %33, %39 : vector<16x128xf32>
    %c21 = arith.constant 21 : index
    %c0_25 = arith.constant 0 : index
    %41 = vector.load %arg1[%c21, %c0_25] : memref<49x128xf32, #tpu.memory_space<vmem>>, vector<1x128xf32>
    %42 = vector.shape_cast %41 : vector<1x128xf32> to vector<128xf32>
    %43 = vector.extract_strided_slice %18 {offsets = [3, 0], sizes = [16, 128], strides = [1, 1]} : vector<22x128xf32> to vector<16x128xf32>
    %44 = vector.shape_cast %42 : vector<128xf32> to vector<1x128xf32>
    %45 = vector.broadcast %44 : vector<1x128xf32> to vector<16x128xf32>
    %46 = arith.mulf %45, %43 : vector<16x128xf32>
    %47 = arith.addf %40, %46 : vector<16x128xf32>
    %c28 = arith.constant 28 : index
    %c0_26 = arith.constant 0 : index
    %48 = vector.load %arg1[%c28, %c0_26] : memref<49x128xf32, #tpu.memory_space<vmem>>, vector<1x128xf32>
    %49 = vector.shape_cast %48 : vector<1x128xf32> to vector<128xf32>
    %50 = vector.extract_strided_slice %18 {offsets = [4, 0], sizes = [16, 128], strides = [1, 1]} : vector<22x128xf32> to vector<16x128xf32>
    %51 = vector.shape_cast %49 : vector<128xf32> to vector<1x128xf32>
    %52 = vector.broadcast %51 : vector<1x128xf32> to vector<16x128xf32>
    %53 = arith.mulf %52, %50 : vector<16x128xf32>
    %54 = arith.addf %47, %53 : vector<16x128xf32>
    %c35_27 = arith.constant 35 : index
    %c0_28 = arith.constant 0 : index
    %55 = vector.load %arg1[%c35_27, %c0_28] : memref<49x128xf32, #tpu.memory_space<vmem>>, vector<1x128xf32>
    %56 = vector.shape_cast %55 : vector<1x128xf32> to vector<128xf32>
    %57 = vector.extract_strided_slice %18 {offsets = [5, 0], sizes = [16, 128], strides = [1, 1]} : vector<22x128xf32> to vector<16x128xf32>
    %58 = vector.shape_cast %56 : vector<128xf32> to vector<1x128xf32>
    %59 = vector.broadcast %58 : vector<1x128xf32> to vector<16x128xf32>
    %60 = arith.mulf %59, %57 : vector<16x128xf32>
    %61 = arith.addf %54, %60 : vector<16x128xf32>
    %c42 = arith.constant 42 : index
    %c0_29 = arith.constant 0 : index
    %62 = vector.load %arg1[%c42, %c0_29] : memref<49x128xf32, #tpu.memory_space<vmem>>, vector<1x128xf32>
    %63 = vector.shape_cast %62 : vector<1x128xf32> to vector<128xf32>
    %64 = vector.extract_strided_slice %18 {offsets = [6, 0], sizes = [16, 128], strides = [1, 1]} : vector<22x128xf32> to vector<16x128xf32>
    %65 = vector.shape_cast %63 : vector<128xf32> to vector<1x128xf32>
    %66 = vector.broadcast %65 : vector<1x128xf32> to vector<16x128xf32>
    %67 = arith.mulf %66, %64 : vector<16x128xf32>
    %68 = arith.addf %61, %67 : vector<16x128xf32>
    %69 = vector.extract_strided_slice %18 {offsets = [0, 1], sizes = [22, 127], strides = [1, 1]} : vector<22x128xf32> to vector<22x127xf32>
    %70 = vector.extract_strided_slice %18 {offsets = [0, 0], sizes = [22, 1], strides = [1, 1]} : vector<22x128xf32> to vector<22x1xf32>
    %71 = tpu.concatenate %69, %70 in 1 : vector<22x127xf32>, vector<22x1xf32> -> vector<22x128xf32>
    %c1_30 = arith.constant 1 : index
    %c0_31 = arith.constant 0 : index
    %72 = vector.load %arg1[%c1_30, %c0_31] : memref<49x128xf32, #tpu.memory_space<vmem>>, vector<1x128xf32>
    %73 = vector.shape_cast %72 : vector<1x128xf32> to vector<128xf32>
    %74 = vector.extract_strided_slice %71 {offsets = [0, 0], sizes = [16, 128], strides = [1, 1]} : vector<22x128xf32> to vector<16x128xf32>
    %75 = vector.shape_cast %73 : vector<128xf32> to vector<1x128xf32>
    %76 = vector.broadcast %75 : vector<1x128xf32> to vector<16x128xf32>
    %77 = arith.mulf %76, %74 : vector<16x128xf32>
    %78 = arith.addf %68, %77 : vector<16x128xf32>
    %c8 = arith.constant 8 : index
    %c0_32 = arith.constant 0 : index
    %79 = vector.load %arg1[%c8, %c0_32] : memref<49x128xf32, #tpu.memory_space<vmem>>, vector<1x128xf32>
    %80 = vector.shape_cast %79 : vector<1x128xf32> to vector<128xf32>
    %81 = vector.extract_strided_slice %71 {offsets = [1, 0], sizes = [16, 128], strides = [1, 1]} : vector<22x128xf32> to vector<16x128xf32>
    %82 = vector.shape_cast %80 : vector<128xf32> to vector<1x128xf32>
    %83 = vector.broadcast %82 : vector<1x128xf32> to vector<16x128xf32>
    %84 = arith.mulf %83, %81 : vector<16x128xf32>
    %85 = arith.addf %78, %84 : vector<16x128xf32>
    %c15 = arith.constant 15 : index
    %c0_33 = arith.constant 0 : index
    %86 = vector.load %arg1[%c15, %c0_33] : memref<49x128xf32, #tpu.memory_space<vmem>>, vector<1x128xf32>
    %87 = vector.shape_cast %86 : vector<1x128xf32> to vector<128xf32>
    %88 = vector.extract_strided_slice %71 {offsets = [2, 0], sizes = [16, 128], strides = [1, 1]} : vector<22x128xf32> to vector<16x128xf32>
    %89 = vector.shape_cast %87 : vector<128xf32> to vector<1x128xf32>
    %90 = vector.broadcast %89 : vector<1x128xf32> to vector<16x128xf32>
    %91 = arith.mulf %90, %88 : vector<16x128xf32>
    %92 = arith.addf %85, %91 : vector<16x128xf32>
    %c22 = arith.constant 22 : index
    %c0_34 = arith.constant 0 : index
    %93 = vector.load %arg1[%c22, %c0_34] : memref<49x128xf32, #tpu.memory_space<vmem>>, vector<1x128xf32>
    %94 = vector.shape_cast %93 : vector<1x128xf32> to vector<128xf32>
    %95 = vector.extract_strided_slice %71 {offsets = [3, 0], sizes = [16, 128], strides = [1, 1]} : vector<22x128xf32> to vector<16x128xf32>
    %96 = vector.shape_cast %94 : vector<128xf32> to vector<1x128xf32>
    %97 = vector.broadcast %96 : vector<1x128xf32> to vector<16x128xf32>
    %98 = arith.mulf %97, %95 : vector<16x128xf32>
    %99 = arith.addf %92, %98 : vector<16x128xf32>
    %c29 = arith.constant 29 : index
    %c0_35 = arith.constant 0 : index
    %100 = vector.load %arg1[%c29, %c0_35] : memref<49x128xf32, #tpu.memory_space<vmem>>, vector<1x128xf32>
    %101 = vector.shape_cast %100 : vector<1x128xf32> to vector<128xf32>
    %102 = vector.extract_strided_slice %71 {offsets = [4, 0], sizes = [16, 128], strides = [1, 1]} : vector<22x128xf32> to vector<16x128xf32>
    %103 = vector.shape_cast %101 : vector<128xf32> to vector<1x128xf32>
    %104 = vector.broadcast %103 : vector<1x128xf32> to vector<16x128xf32>
    %105 = arith.mulf %104, %102 : vector<16x128xf32>
    %106 = arith.addf %99, %105 : vector<16x128xf32>
    %c36 = arith.constant 36 : index
    %c0_36 = arith.constant 0 : index
    %107 = vector.load %arg1[%c36, %c0_36] : memref<49x128xf32, #tpu.memory_space<vmem>>, vector<1x128xf32>
    %108 = vector.shape_cast %107 : vector<1x128xf32> to vector<128xf32>
    %109 = vector.extract_strided_slice %71 {offsets = [5, 0], sizes = [16, 128], strides = [1, 1]} : vector<22x128xf32> to vector<16x128xf32>
    %110 = vector.shape_cast %108 : vector<128xf32> to vector<1x128xf32>
    %111 = vector.broadcast %110 : vector<1x128xf32> to vector<16x128xf32>
    %112 = arith.mulf %111, %109 : vector<16x128xf32>
    %113 = arith.addf %106, %112 : vector<16x128xf32>
    %c43 = arith.constant 43 : index
    %c0_37 = arith.constant 0 : index
    %114 = vector.load %arg1[%c43, %c0_37] : memref<49x128xf32, #tpu.memory_space<vmem>>, vector<1x128xf32>
    %115 = vector.shape_cast %114 : vector<1x128xf32> to vector<128xf32>
    %116 = vector.extract_strided_slice %71 {offsets = [6, 0], sizes = [16, 128], strides = [1, 1]} : vector<22x128xf32> to vector<16x128xf32>
    %117 = vector.shape_cast %115 : vector<128xf32> to vector<1x128xf32>
    %118 = vector.broadcast %117 : vector<1x128xf32> to vector<16x128xf32>
    %119 = arith.mulf %118, %116 : vector<16x128xf32>
    %120 = arith.addf %113, %119 : vector<16x128xf32>
    %121 = vector.extract_strided_slice %18 {offsets = [0, 2], sizes = [22, 126], strides = [1, 1]} : vector<22x128xf32> to vector<22x126xf32>
    %122 = vector.extract_strided_slice %18 {offsets = [0, 0], sizes = [22, 2], strides = [1, 1]} : vector<22x128xf32> to vector<22x2xf32>
    %123 = tpu.concatenate %121, %122 in 1 : vector<22x126xf32>, vector<22x2xf32> -> vector<22x128xf32>
    %c2 = arith.constant 2 : index
    %c0_38 = arith.constant 0 : index
    %124 = vector.load %arg1[%c2, %c0_38] : memref<49x128xf32, #tpu.memory_space<vmem>>, vector<1x128xf32>
    %125 = vector.shape_cast %124 : vector<1x128xf32> to vector<128xf32>
    %126 = vector.extract_strided_slice %123 {offsets = [0, 0], sizes = [16, 128], strides = [1, 1]} : vector<22x128xf32> to vector<16x128xf32>
    %127 = vector.shape_cast %125 : vector<128xf32> to vector<1x128xf32>
    %128 = vector.broadcast %127 : vector<1x128xf32> to vector<16x128xf32>
    %129 = arith.mulf %128, %126 : vector<16x128xf32>
    %130 = arith.addf %120, %129 : vector<16x128xf32>
    %c9 = arith.constant 9 : index
    %c0_39 = arith.constant 0 : index
    %131 = vector.load %arg1[%c9, %c0_39] : memref<49x128xf32, #tpu.memory_space<vmem>>, vector<1x128xf32>
    %132 = vector.shape_cast %131 : vector<1x128xf32> to vector<128xf32>
    %133 = vector.extract_strided_slice %123 {offsets = [1, 0], sizes = [16, 128], strides = [1, 1]} : vector<22x128xf32> to vector<16x128xf32>
    %134 = vector.shape_cast %132 : vector<128xf32> to vector<1x128xf32>
    %135 = vector.broadcast %134 : vector<1x128xf32> to vector<16x128xf32>
    %136 = arith.mulf %135, %133 : vector<16x128xf32>
    %137 = arith.addf %130, %136 : vector<16x128xf32>
    %c16 = arith.constant 16 : index
    %c0_40 = arith.constant 0 : index
    %138 = vector.load %arg1[%c16, %c0_40] : memref<49x128xf32, #tpu.memory_space<vmem>>, vector<1x128xf32>
    %139 = vector.shape_cast %138 : vector<1x128xf32> to vector<128xf32>
    %140 = vector.extract_strided_slice %123 {offsets = [2, 0], sizes = [16, 128], strides = [1, 1]} : vector<22x128xf32> to vector<16x128xf32>
    %141 = vector.shape_cast %139 : vector<128xf32> to vector<1x128xf32>
    %142 = vector.broadcast %141 : vector<1x128xf32> to vector<16x128xf32>
    %143 = arith.mulf %142, %140 : vector<16x128xf32>
    %144 = arith.addf %137, %143 : vector<16x128xf32>
    %c23 = arith.constant 23 : index
    %c0_41 = arith.constant 0 : index
    %145 = vector.load %arg1[%c23, %c0_41] : memref<49x128xf32, #tpu.memory_space<vmem>>, vector<1x128xf32>
    %146 = vector.shape_cast %145 : vector<1x128xf32> to vector<128xf32>
    %147 = vector.extract_strided_slice %123 {offsets = [3, 0], sizes = [16, 128], strides = [1, 1]} : vector<22x128xf32> to vector<16x128xf32>
    %148 = vector.shape_cast %146 : vector<128xf32> to vector<1x128xf32>
    %149 = vector.broadcast %148 : vector<1x128xf32> to vector<16x128xf32>
    %150 = arith.mulf %149, %147 : vector<16x128xf32>
    %151 = arith.addf %144, %150 : vector<16x128xf32>
    %c30 = arith.constant 30 : index
    %c0_42 = arith.constant 0 : index
    %152 = vector.load %arg1[%c30, %c0_42] : memref<49x128xf32, #tpu.memory_space<vmem>>, vector<1x128xf32>
    %153 = vector.shape_cast %152 : vector<1x128xf32> to vector<128xf32>
    %154 = vector.extract_strided_slice %123 {offsets = [4, 0], sizes = [16, 128], strides = [1, 1]} : vector<22x128xf32> to vector<16x128xf32>
    %155 = vector.shape_cast %153 : vector<128xf32> to vector<1x128xf32>
    %156 = vector.broadcast %155 : vector<1x128xf32> to vector<16x128xf32>
    %157 = arith.mulf %156, %154 : vector<16x128xf32>
    %158 = arith.addf %151, %157 : vector<16x128xf32>
    %c37 = arith.constant 37 : index
    %c0_43 = arith.constant 0 : index
    %159 = vector.load %arg1[%c37, %c0_43] : memref<49x128xf32, #tpu.memory_space<vmem>>, vector<1x128xf32>
    %160 = vector.shape_cast %159 : vector<1x128xf32> to vector<128xf32>
    %161 = vector.extract_strided_slice %123 {offsets = [5, 0], sizes = [16, 128], strides = [1, 1]} : vector<22x128xf32> to vector<16x128xf32>
    %162 = vector.shape_cast %160 : vector<128xf32> to vector<1x128xf32>
    %163 = vector.broadcast %162 : vector<1x128xf32> to vector<16x128xf32>
    %164 = arith.mulf %163, %161 : vector<16x128xf32>
    %165 = arith.addf %158, %164 : vector<16x128xf32>
    %c44 = arith.constant 44 : index
    %c0_44 = arith.constant 0 : index
    %166 = vector.load %arg1[%c44, %c0_44] : memref<49x128xf32, #tpu.memory_space<vmem>>, vector<1x128xf32>
    %167 = vector.shape_cast %166 : vector<1x128xf32> to vector<128xf32>
    %168 = vector.extract_strided_slice %123 {offsets = [6, 0], sizes = [16, 128], strides = [1, 1]} : vector<22x128xf32> to vector<16x128xf32>
    %169 = vector.shape_cast %167 : vector<128xf32> to vector<1x128xf32>
    %170 = vector.broadcast %169 : vector<1x128xf32> to vector<16x128xf32>
    %171 = arith.mulf %170, %168 : vector<16x128xf32>
    %172 = arith.addf %165, %171 : vector<16x128xf32>
    %173 = vector.extract_strided_slice %18 {offsets = [0, 3], sizes = [22, 125], strides = [1, 1]} : vector<22x128xf32> to vector<22x125xf32>
    %174 = vector.extract_strided_slice %18 {offsets = [0, 0], sizes = [22, 3], strides = [1, 1]} : vector<22x128xf32> to vector<22x3xf32>
    %175 = tpu.concatenate %173, %174 in 1 : vector<22x125xf32>, vector<22x3xf32> -> vector<22x128xf32>
    %c3_45 = arith.constant 3 : index
    %c0_46 = arith.constant 0 : index
    %176 = vector.load %arg1[%c3_45, %c0_46] : memref<49x128xf32, #tpu.memory_space<vmem>>, vector<1x128xf32>
    %177 = vector.shape_cast %176 : vector<1x128xf32> to vector<128xf32>
    %178 = vector.extract_strided_slice %175 {offsets = [0, 0], sizes = [16, 128], strides = [1, 1]} : vector<22x128xf32> to vector<16x128xf32>
    %179 = vector.shape_cast %177 : vector<128xf32> to vector<1x128xf32>
    %180 = vector.broadcast %179 : vector<1x128xf32> to vector<16x128xf32>
    %181 = arith.mulf %180, %178 : vector<16x128xf32>
    %182 = arith.addf %172, %181 : vector<16x128xf32>
    %c10 = arith.constant 10 : index
    %c0_47 = arith.constant 0 : index
    %183 = vector.load %arg1[%c10, %c0_47] : memref<49x128xf32, #tpu.memory_space<vmem>>, vector<1x128xf32>
    %184 = vector.shape_cast %183 : vector<1x128xf32> to vector<128xf32>
    %185 = vector.extract_strided_slice %175 {offsets = [1, 0], sizes = [16, 128], strides = [1, 1]} : vector<22x128xf32> to vector<16x128xf32>
    %186 = vector.shape_cast %184 : vector<128xf32> to vector<1x128xf32>
    %187 = vector.broadcast %186 : vector<1x128xf32> to vector<16x128xf32>
    %188 = arith.mulf %187, %185 : vector<16x128xf32>
    %189 = arith.addf %182, %188 : vector<16x128xf32>
    %c17 = arith.constant 17 : index
    %c0_48 = arith.constant 0 : index
    %190 = vector.load %arg1[%c17, %c0_48] : memref<49x128xf32, #tpu.memory_space<vmem>>, vector<1x128xf32>
    %191 = vector.shape_cast %190 : vector<1x128xf32> to vector<128xf32>
    %192 = vector.extract_strided_slice %175 {offsets = [2, 0], sizes = [16, 128], strides = [1, 1]} : vector<22x128xf32> to vector<16x128xf32>
    %193 = vector.shape_cast %191 : vector<128xf32> to vector<1x128xf32>
    %194 = vector.broadcast %193 : vector<1x128xf32> to vector<16x128xf32>
    %195 = arith.mulf %194, %192 : vector<16x128xf32>
    %196 = arith.addf %189, %195 : vector<16x128xf32>
    %c24 = arith.constant 24 : index
    %c0_49 = arith.constant 0 : index
    %197 = vector.load %arg1[%c24, %c0_49] : memref<49x128xf32, #tpu.memory_space<vmem>>, vector<1x128xf32>
    %198 = vector.shape_cast %197 : vector<1x128xf32> to vector<128xf32>
    %199 = vector.extract_strided_slice %175 {offsets = [3, 0], sizes = [16, 128], strides = [1, 1]} : vector<22x128xf32> to vector<16x128xf32>
    %200 = vector.shape_cast %198 : vector<128xf32> to vector<1x128xf32>
    %201 = vector.broadcast %200 : vector<1x128xf32> to vector<16x128xf32>
    %202 = arith.mulf %201, %199 : vector<16x128xf32>
    %203 = arith.addf %196, %202 : vector<16x128xf32>
    %c31 = arith.constant 31 : index
    %c0_50 = arith.constant 0 : index
    %204 = vector.load %arg1[%c31, %c0_50] : memref<49x128xf32, #tpu.memory_space<vmem>>, vector<1x128xf32>
    %205 = vector.shape_cast %204 : vector<1x128xf32> to vector<128xf32>
    %206 = vector.extract_strided_slice %175 {offsets = [4, 0], sizes = [16, 128], strides = [1, 1]} : vector<22x128xf32> to vector<16x128xf32>
    %207 = vector.shape_cast %205 : vector<128xf32> to vector<1x128xf32>
    %208 = vector.broadcast %207 : vector<1x128xf32> to vector<16x128xf32>
    %209 = arith.mulf %208, %206 : vector<16x128xf32>
    %210 = arith.addf %203, %209 : vector<16x128xf32>
    %c38 = arith.constant 38 : index
    %c0_51 = arith.constant 0 : index
    %211 = vector.load %arg1[%c38, %c0_51] : memref<49x128xf32, #tpu.memory_space<vmem>>, vector<1x128xf32>
    %212 = vector.shape_cast %211 : vector<1x128xf32> to vector<128xf32>
    %213 = vector.extract_strided_slice %175 {offsets = [5, 0], sizes = [16, 128], strides = [1, 1]} : vector<22x128xf32> to vector<16x128xf32>
    %214 = vector.shape_cast %212 : vector<128xf32> to vector<1x128xf32>
    %215 = vector.broadcast %214 : vector<1x128xf32> to vector<16x128xf32>
    %216 = arith.mulf %215, %213 : vector<16x128xf32>
    %217 = arith.addf %210, %216 : vector<16x128xf32>
    %c45 = arith.constant 45 : index
    %c0_52 = arith.constant 0 : index
    %218 = vector.load %arg1[%c45, %c0_52] : memref<49x128xf32, #tpu.memory_space<vmem>>, vector<1x128xf32>
    %219 = vector.shape_cast %218 : vector<1x128xf32> to vector<128xf32>
    %220 = vector.extract_strided_slice %175 {offsets = [6, 0], sizes = [16, 128], strides = [1, 1]} : vector<22x128xf32> to vector<16x128xf32>
    %221 = vector.shape_cast %219 : vector<128xf32> to vector<1x128xf32>
    %222 = vector.broadcast %221 : vector<1x128xf32> to vector<16x128xf32>
    %223 = arith.mulf %222, %220 : vector<16x128xf32>
    %224 = arith.addf %217, %223 : vector<16x128xf32>
    %225 = vector.extract_strided_slice %18 {offsets = [0, 4], sizes = [22, 124], strides = [1, 1]} : vector<22x128xf32> to vector<22x124xf32>
    %226 = vector.extract_strided_slice %18 {offsets = [0, 0], sizes = [22, 4], strides = [1, 1]} : vector<22x128xf32> to vector<22x4xf32>
    %227 = tpu.concatenate %225, %226 in 1 : vector<22x124xf32>, vector<22x4xf32> -> vector<22x128xf32>
    %c4 = arith.constant 4 : index
    %c0_53 = arith.constant 0 : index
    %228 = vector.load %arg1[%c4, %c0_53] : memref<49x128xf32, #tpu.memory_space<vmem>>, vector<1x128xf32>
    %229 = vector.shape_cast %228 : vector<1x128xf32> to vector<128xf32>
    %230 = vector.extract_strided_slice %227 {offsets = [0, 0], sizes = [16, 128], strides = [1, 1]} : vector<22x128xf32> to vector<16x128xf32>
    %231 = vector.shape_cast %229 : vector<128xf32> to vector<1x128xf32>
    %232 = vector.broadcast %231 : vector<1x128xf32> to vector<16x128xf32>
    %233 = arith.mulf %232, %230 : vector<16x128xf32>
    %234 = arith.addf %224, %233 : vector<16x128xf32>
    %c11 = arith.constant 11 : index
    %c0_54 = arith.constant 0 : index
    %235 = vector.load %arg1[%c11, %c0_54] : memref<49x128xf32, #tpu.memory_space<vmem>>, vector<1x128xf32>
    %236 = vector.shape_cast %235 : vector<1x128xf32> to vector<128xf32>
    %237 = vector.extract_strided_slice %227 {offsets = [1, 0], sizes = [16, 128], strides = [1, 1]} : vector<22x128xf32> to vector<16x128xf32>
    %238 = vector.shape_cast %236 : vector<128xf32> to vector<1x128xf32>
    %239 = vector.broadcast %238 : vector<1x128xf32> to vector<16x128xf32>
    %240 = arith.mulf %239, %237 : vector<16x128xf32>
    %241 = arith.addf %234, %240 : vector<16x128xf32>
    %c18 = arith.constant 18 : index
    %c0_55 = arith.constant 0 : index
    %242 = vector.load %arg1[%c18, %c0_55] : memref<49x128xf32, #tpu.memory_space<vmem>>, vector<1x128xf32>
    %243 = vector.shape_cast %242 : vector<1x128xf32> to vector<128xf32>
    %244 = vector.extract_strided_slice %227 {offsets = [2, 0], sizes = [16, 128], strides = [1, 1]} : vector<22x128xf32> to vector<16x128xf32>
    %245 = vector.shape_cast %243 : vector<128xf32> to vector<1x128xf32>
    %246 = vector.broadcast %245 : vector<1x128xf32> to vector<16x128xf32>
    %247 = arith.mulf %246, %244 : vector<16x128xf32>
    %248 = arith.addf %241, %247 : vector<16x128xf32>
    %c25 = arith.constant 25 : index
    %c0_56 = arith.constant 0 : index
    %249 = vector.load %arg1[%c25, %c0_56] : memref<49x128xf32, #tpu.memory_space<vmem>>, vector<1x128xf32>
    %250 = vector.shape_cast %249 : vector<1x128xf32> to vector<128xf32>
    %251 = vector.extract_strided_slice %227 {offsets = [3, 0], sizes = [16, 128], strides = [1, 1]} : vector<22x128xf32> to vector<16x128xf32>
    %252 = vector.shape_cast %250 : vector<128xf32> to vector<1x128xf32>
    %253 = vector.broadcast %252 : vector<1x128xf32> to vector<16x128xf32>
    %254 = arith.mulf %253, %251 : vector<16x128xf32>
    %255 = arith.addf %248, %254 : vector<16x128xf32>
    %c32 = arith.constant 32 : index
    %c0_57 = arith.constant 0 : index
    %256 = vector.load %arg1[%c32, %c0_57] : memref<49x128xf32, #tpu.memory_space<vmem>>, vector<1x128xf32>
    %257 = vector.shape_cast %256 : vector<1x128xf32> to vector<128xf32>
    %258 = vector.extract_strided_slice %227 {offsets = [4, 0], sizes = [16, 128], strides = [1, 1]} : vector<22x128xf32> to vector<16x128xf32>
    %259 = vector.shape_cast %257 : vector<128xf32> to vector<1x128xf32>
    %260 = vector.broadcast %259 : vector<1x128xf32> to vector<16x128xf32>
    %261 = arith.mulf %260, %258 : vector<16x128xf32>
    %262 = arith.addf %255, %261 : vector<16x128xf32>
    %c39 = arith.constant 39 : index
    %c0_58 = arith.constant 0 : index
    %263 = vector.load %arg1[%c39, %c0_58] : memref<49x128xf32, #tpu.memory_space<vmem>>, vector<1x128xf32>
    %264 = vector.shape_cast %263 : vector<1x128xf32> to vector<128xf32>
    %265 = vector.extract_strided_slice %227 {offsets = [5, 0], sizes = [16, 128], strides = [1, 1]} : vector<22x128xf32> to vector<16x128xf32>
    %266 = vector.shape_cast %264 : vector<128xf32> to vector<1x128xf32>
    %267 = vector.broadcast %266 : vector<1x128xf32> to vector<16x128xf32>
    %268 = arith.mulf %267, %265 : vector<16x128xf32>
    %269 = arith.addf %262, %268 : vector<16x128xf32>
    %c46 = arith.constant 46 : index
    %c0_59 = arith.constant 0 : index
    %270 = vector.load %arg1[%c46, %c0_59] : memref<49x128xf32, #tpu.memory_space<vmem>>, vector<1x128xf32>
    %271 = vector.shape_cast %270 : vector<1x128xf32> to vector<128xf32>
    %272 = vector.extract_strided_slice %227 {offsets = [6, 0], sizes = [16, 128], strides = [1, 1]} : vector<22x128xf32> to vector<16x128xf32>
    %273 = vector.shape_cast %271 : vector<128xf32> to vector<1x128xf32>
    %274 = vector.broadcast %273 : vector<1x128xf32> to vector<16x128xf32>
    %275 = arith.mulf %274, %272 : vector<16x128xf32>
    %276 = arith.addf %269, %275 : vector<16x128xf32>
    %277 = vector.extract_strided_slice %18 {offsets = [0, 5], sizes = [22, 123], strides = [1, 1]} : vector<22x128xf32> to vector<22x123xf32>
    %278 = vector.extract_strided_slice %18 {offsets = [0, 0], sizes = [22, 5], strides = [1, 1]} : vector<22x128xf32> to vector<22x5xf32>
    %279 = tpu.concatenate %277, %278 in 1 : vector<22x123xf32>, vector<22x5xf32> -> vector<22x128xf32>
    %c5 = arith.constant 5 : index
    %c0_60 = arith.constant 0 : index
    %280 = vector.load %arg1[%c5, %c0_60] : memref<49x128xf32, #tpu.memory_space<vmem>>, vector<1x128xf32>
    %281 = vector.shape_cast %280 : vector<1x128xf32> to vector<128xf32>
    %282 = vector.extract_strided_slice %279 {offsets = [0, 0], sizes = [16, 128], strides = [1, 1]} : vector<22x128xf32> to vector<16x128xf32>
    %283 = vector.shape_cast %281 : vector<128xf32> to vector<1x128xf32>
    %284 = vector.broadcast %283 : vector<1x128xf32> to vector<16x128xf32>
    %285 = arith.mulf %284, %282 : vector<16x128xf32>
    %286 = arith.addf %276, %285 : vector<16x128xf32>
    %c12 = arith.constant 12 : index
    %c0_61 = arith.constant 0 : index
    %287 = vector.load %arg1[%c12, %c0_61] : memref<49x128xf32, #tpu.memory_space<vmem>>, vector<1x128xf32>
    %288 = vector.shape_cast %287 : vector<1x128xf32> to vector<128xf32>
    %289 = vector.extract_strided_slice %279 {offsets = [1, 0], sizes = [16, 128], strides = [1, 1]} : vector<22x128xf32> to vector<16x128xf32>
    %290 = vector.shape_cast %288 : vector<128xf32> to vector<1x128xf32>
    %291 = vector.broadcast %290 : vector<1x128xf32> to vector<16x128xf32>
    %292 = arith.mulf %291, %289 : vector<16x128xf32>
    %293 = arith.addf %286, %292 : vector<16x128xf32>
    %c19 = arith.constant 19 : index
    %c0_62 = arith.constant 0 : index
    %294 = vector.load %arg1[%c19, %c0_62] : memref<49x128xf32, #tpu.memory_space<vmem>>, vector<1x128xf32>
    %295 = vector.shape_cast %294 : vector<1x128xf32> to vector<128xf32>
    %296 = vector.extract_strided_slice %279 {offsets = [2, 0], sizes = [16, 128], strides = [1, 1]} : vector<22x128xf32> to vector<16x128xf32>
    %297 = vector.shape_cast %295 : vector<128xf32> to vector<1x128xf32>
    %298 = vector.broadcast %297 : vector<1x128xf32> to vector<16x128xf32>
    %299 = arith.mulf %298, %296 : vector<16x128xf32>
    %300 = arith.addf %293, %299 : vector<16x128xf32>
    %c26 = arith.constant 26 : index
    %c0_63 = arith.constant 0 : index
    %301 = vector.load %arg1[%c26, %c0_63] : memref<49x128xf32, #tpu.memory_space<vmem>>, vector<1x128xf32>
    %302 = vector.shape_cast %301 : vector<1x128xf32> to vector<128xf32>
    %303 = vector.extract_strided_slice %279 {offsets = [3, 0], sizes = [16, 128], strides = [1, 1]} : vector<22x128xf32> to vector<16x128xf32>
    %304 = vector.shape_cast %302 : vector<128xf32> to vector<1x128xf32>
    %305 = vector.broadcast %304 : vector<1x128xf32> to vector<16x128xf32>
    %306 = arith.mulf %305, %303 : vector<16x128xf32>
    %307 = arith.addf %300, %306 : vector<16x128xf32>
    %c33 = arith.constant 33 : index
    %c0_64 = arith.constant 0 : index
    %308 = vector.load %arg1[%c33, %c0_64] : memref<49x128xf32, #tpu.memory_space<vmem>>, vector<1x128xf32>
    %309 = vector.shape_cast %308 : vector<1x128xf32> to vector<128xf32>
    %310 = vector.extract_strided_slice %279 {offsets = [4, 0], sizes = [16, 128], strides = [1, 1]} : vector<22x128xf32> to vector<16x128xf32>
    %311 = vector.shape_cast %309 : vector<128xf32> to vector<1x128xf32>
    %312 = vector.broadcast %311 : vector<1x128xf32> to vector<16x128xf32>
    %313 = arith.mulf %312, %310 : vector<16x128xf32>
    %314 = arith.addf %307, %313 : vector<16x128xf32>
    %c40 = arith.constant 40 : index
    %c0_65 = arith.constant 0 : index
    %315 = vector.load %arg1[%c40, %c0_65] : memref<49x128xf32, #tpu.memory_space<vmem>>, vector<1x128xf32>
    %316 = vector.shape_cast %315 : vector<1x128xf32> to vector<128xf32>
    %317 = vector.extract_strided_slice %279 {offsets = [5, 0], sizes = [16, 128], strides = [1, 1]} : vector<22x128xf32> to vector<16x128xf32>
    %318 = vector.shape_cast %316 : vector<128xf32> to vector<1x128xf32>
    %319 = vector.broadcast %318 : vector<1x128xf32> to vector<16x128xf32>
    %320 = arith.mulf %319, %317 : vector<16x128xf32>
    %321 = arith.addf %314, %320 : vector<16x128xf32>
    %c47 = arith.constant 47 : index
    %c0_66 = arith.constant 0 : index
    %322 = vector.load %arg1[%c47, %c0_66] : memref<49x128xf32, #tpu.memory_space<vmem>>, vector<1x128xf32>
    %323 = vector.shape_cast %322 : vector<1x128xf32> to vector<128xf32>
    %324 = vector.extract_strided_slice %279 {offsets = [6, 0], sizes = [16, 128], strides = [1, 1]} : vector<22x128xf32> to vector<16x128xf32>
    %325 = vector.shape_cast %323 : vector<128xf32> to vector<1x128xf32>
    %326 = vector.broadcast %325 : vector<1x128xf32> to vector<16x128xf32>
    %327 = arith.mulf %326, %324 : vector<16x128xf32>
    %328 = arith.addf %321, %327 : vector<16x128xf32>
    %329 = vector.extract_strided_slice %18 {offsets = [0, 6], sizes = [22, 122], strides = [1, 1]} : vector<22x128xf32> to vector<22x122xf32>
    %330 = vector.extract_strided_slice %18 {offsets = [0, 0], sizes = [22, 6], strides = [1, 1]} : vector<22x128xf32> to vector<22x6xf32>
    %331 = tpu.concatenate %329, %330 in 1 : vector<22x122xf32>, vector<22x6xf32> -> vector<22x128xf32>
    %c6 = arith.constant 6 : index
    %c0_67 = arith.constant 0 : index
    %332 = vector.load %arg1[%c6, %c0_67] : memref<49x128xf32, #tpu.memory_space<vmem>>, vector<1x128xf32>
    %333 = vector.shape_cast %332 : vector<1x128xf32> to vector<128xf32>
    %334 = vector.extract_strided_slice %331 {offsets = [0, 0], sizes = [16, 128], strides = [1, 1]} : vector<22x128xf32> to vector<16x128xf32>
    %335 = vector.shape_cast %333 : vector<128xf32> to vector<1x128xf32>
    %336 = vector.broadcast %335 : vector<1x128xf32> to vector<16x128xf32>
    %337 = arith.mulf %336, %334 : vector<16x128xf32>
    %338 = arith.addf %328, %337 : vector<16x128xf32>
    %c13 = arith.constant 13 : index
    %c0_68 = arith.constant 0 : index
    %339 = vector.load %arg1[%c13, %c0_68] : memref<49x128xf32, #tpu.memory_space<vmem>>, vector<1x128xf32>
    %340 = vector.shape_cast %339 : vector<1x128xf32> to vector<128xf32>
    %341 = vector.extract_strided_slice %331 {offsets = [1, 0], sizes = [16, 128], strides = [1, 1]} : vector<22x128xf32> to vector<16x128xf32>
    %342 = vector.shape_cast %340 : vector<128xf32> to vector<1x128xf32>
    %343 = vector.broadcast %342 : vector<1x128xf32> to vector<16x128xf32>
    %344 = arith.mulf %343, %341 : vector<16x128xf32>
    %345 = arith.addf %338, %344 : vector<16x128xf32>
    %c20 = arith.constant 20 : index
    %c0_69 = arith.constant 0 : index
    %346 = vector.load %arg1[%c20, %c0_69] : memref<49x128xf32, #tpu.memory_space<vmem>>, vector<1x128xf32>
    %347 = vector.shape_cast %346 : vector<1x128xf32> to vector<128xf32>
    %348 = vector.extract_strided_slice %331 {offsets = [2, 0], sizes = [16, 128], strides = [1, 1]} : vector<22x128xf32> to vector<16x128xf32>
    %349 = vector.shape_cast %347 : vector<128xf32> to vector<1x128xf32>
    %350 = vector.broadcast %349 : vector<1x128xf32> to vector<16x128xf32>
    %351 = arith.mulf %350, %348 : vector<16x128xf32>
    %352 = arith.addf %345, %351 : vector<16x128xf32>
    %c27 = arith.constant 27 : index
    %c0_70 = arith.constant 0 : index
    %353 = vector.load %arg1[%c27, %c0_70] : memref<49x128xf32, #tpu.memory_space<vmem>>, vector<1x128xf32>
    %354 = vector.shape_cast %353 : vector<1x128xf32> to vector<128xf32>
    %355 = vector.extract_strided_slice %331 {offsets = [3, 0], sizes = [16, 128], strides = [1, 1]} : vector<22x128xf32> to vector<16x128xf32>
    %356 = vector.shape_cast %354 : vector<128xf32> to vector<1x128xf32>
    %357 = vector.broadcast %356 : vector<1x128xf32> to vector<16x128xf32>
    %358 = arith.mulf %357, %355 : vector<16x128xf32>
    %359 = arith.addf %352, %358 : vector<16x128xf32>
    %c34 = arith.constant 34 : index
    %c0_71 = arith.constant 0 : index
    %360 = vector.load %arg1[%c34, %c0_71] : memref<49x128xf32, #tpu.memory_space<vmem>>, vector<1x128xf32>
    %361 = vector.shape_cast %360 : vector<1x128xf32> to vector<128xf32>
    %362 = vector.extract_strided_slice %331 {offsets = [4, 0], sizes = [16, 128], strides = [1, 1]} : vector<22x128xf32> to vector<16x128xf32>
    %363 = vector.shape_cast %361 : vector<128xf32> to vector<1x128xf32>
    %364 = vector.broadcast %363 : vector<1x128xf32> to vector<16x128xf32>
    %365 = arith.mulf %364, %362 : vector<16x128xf32>
    %366 = arith.addf %359, %365 : vector<16x128xf32>
    %c41 = arith.constant 41 : index
    %c0_72 = arith.constant 0 : index
    %367 = vector.load %arg1[%c41, %c0_72] : memref<49x128xf32, #tpu.memory_space<vmem>>, vector<1x128xf32>
    %368 = vector.shape_cast %367 : vector<1x128xf32> to vector<128xf32>
    %369 = vector.extract_strided_slice %331 {offsets = [5, 0], sizes = [16, 128], strides = [1, 1]} : vector<22x128xf32> to vector<16x128xf32>
    %370 = vector.shape_cast %368 : vector<128xf32> to vector<1x128xf32>
    %371 = vector.broadcast %370 : vector<1x128xf32> to vector<16x128xf32>
    %372 = arith.mulf %371, %369 : vector<16x128xf32>
    %373 = arith.addf %366, %372 : vector<16x128xf32>
    %c48 = arith.constant 48 : index
    %c0_73 = arith.constant 0 : index
    %374 = vector.load %arg1[%c48, %c0_73] : memref<49x128xf32, #tpu.memory_space<vmem>>, vector<1x128xf32>
    %375 = vector.shape_cast %374 : vector<1x128xf32> to vector<128xf32>
    %376 = vector.extract_strided_slice %331 {offsets = [6, 0], sizes = [16, 128], strides = [1, 1]} : vector<22x128xf32> to vector<16x128xf32>
    %377 = vector.shape_cast %375 : vector<128xf32> to vector<1x128xf32>
    %378 = vector.broadcast %377 : vector<1x128xf32> to vector<16x128xf32>
    %379 = arith.mulf %378, %376 : vector<16x128xf32>
    %380 = arith.addf %373, %379 : vector<16x128xf32>
    %381 = vector.extract_strided_slice %380 {offsets = [0, 0], sizes = [16, 32], strides = [1, 1]} : vector<16x128xf32> to vector<16x32xf32>
    %382 = vector.extract_strided_slice %380 {offsets = [0, 32], sizes = [16, 32], strides = [1, 1]} : vector<16x128xf32> to vector<16x32xf32>
    %383 = arith.addf %381, %382 : vector<16x32xf32>
    %384 = vector.extract_strided_slice %383 {offsets = [0, 0], sizes = [16, 16], strides = [1, 1]} : vector<16x32xf32> to vector<16x16xf32>
    %cst_74 = arith.constant 0.000000e+00 : f32
    %385 = vector.broadcast %cst_74 : f32 to vector<16x16xf32>
    %386 = arith.subf %385, %384 : vector<16x16xf32>
    %387 = math.exp %386 : vector<16x16xf32>
    %cst_75 = arith.constant 1.000000e+00 : f32
    %388 = vector.broadcast %cst_75 : f32 to vector<16x16xf32>
    %389 = arith.addf %388, %387 : vector<16x16xf32>
    %cst_76 = arith.constant 1.000000e+00 : f32
    %390 = vector.broadcast %cst_76 : f32 to vector<16x16xf32>
    %391 = arith.divf %390, %389 : vector<16x16xf32>
    %c0_77 = arith.constant 0 : index
    %c0_78 = arith.constant 0 : index
    %c0_79 = arith.constant 0 : index
    %392 = vector.load %arg2[%c0_77, %c0_78, %c0_79] : memref<2x16x16xf32, #tpu.memory_space<vmem>>, vector<1x16x16xf32>
    %393 = vector.shape_cast %392 : vector<1x16x16xf32> to vector<16x16xf32>
    %394 = vector.shape_cast %391 : vector<16x16xf32> to vector<1x16x16xf32>
    tpu.vector_store %arg2[%c0_77, %c0_78, %c0_79], %394 {strides = array<i32>} : memref<2x16x16xf32, #tpu.memory_space<vmem>>, vector<1x16x16xf32>,
    %395 = vector.extract_strided_slice %380 {offsets = [0, 64], sizes = [16, 32], strides = [1, 1]} : vector<16x128xf32> to vector<16x32xf32>
    %396 = vector.extract_strided_slice %380 {offsets = [0, 96], sizes = [16, 32], strides = [1, 1]} : vector<16x128xf32> to vector<16x32xf32>
    %397 = arith.addf %395, %396 : vector<16x32xf32>
    %398 = vector.extract_strided_slice %397 {offsets = [0, 0], sizes = [16, 16], strides = [1, 1]} : vector<16x32xf32> to vector<16x16xf32>
    %cst_80 = arith.constant 0.000000e+00 : f32
    %399 = vector.broadcast %cst_80 : f32 to vector<16x16xf32>
    %400 = arith.subf %399, %398 : vector<16x16xf32>
    %401 = math.exp %400 : vector<16x16xf32>
    %cst_81 = arith.constant 1.000000e+00 : f32
    %402 = vector.broadcast %cst_81 : f32 to vector<16x16xf32>
    %403 = arith.addf %402, %401 : vector<16x16xf32>
    %cst_82 = arith.constant 1.000000e+00 : f32
    %404 = vector.broadcast %cst_82 : f32 to vector<16x16xf32>
    %405 = arith.divf %404, %403 : vector<16x16xf32>
    %c1_83 = arith.constant 1 : index
    %c0_84 = arith.constant 0 : index
    %c0_85 = arith.constant 0 : index
    %406 = vector.load %arg2[%c1_83, %c0_84, %c0_85] : memref<2x16x16xf32, #tpu.memory_space<vmem>>, vector<1x16x16xf32>
    %407 = vector.shape_cast %406 : vector<1x16x16xf32> to vector<16x16xf32>
    %408 = vector.shape_cast %405 : vector<16x16xf32> to vector<1x16x16xf32>
    tpu.vector_store %arg2[%c1_83, %c0_84, %c0_85], %408 {strides = array<i32>} : memref<2x16x16xf32, #tpu.memory_space<vmem>>, vector<1x16x16xf32>,
    return
  }
}

</mosaic_0001>

<bundles_post_ra>
// kernel: spatial_attention.1
= control target key start
LH: loop header
LB: loop body
LE: loop exit
PB: predicated region body
PF: predicated region fallthrough
CT: control target
= control target key end

     0   :  { %vm47_vm0 = vcmask 523264   ;;  %s3974_s0 = inlined_call_operand.vmem [shape: f32[2,16,16,64], index: 0, kind: input, shape index: {}]   ;;  %s3975_s1 = inlined_call_operand.vmem [shape: f32[49,128], index: 1, kind: input, shape index: {}]   ;;  %s3976_s2 = inlined_call_operand.hbm [shape: f32[2,16,16], index: 2, kind: output, shape index: {}]  }
   0x1   :  { %v2507_v0 = vld [vmem:[%s3974_s0 + $0x10] sm:$0xff]  ;;  %v2512_v1 = vld [vmem:[%s3974_s0] sm:$0xff]  ;;  %v2517_v2 = vld [vmem:[%s3974_s0 + $0x18] sm:$0xff] }
   0x2   :  { %v54_v3 = vsel %vm47_vm0, %v2507_v0, 0.0  ;;  %v48_v4 = vsel %vm47_vm0, %v2512_v1, 0.0  ;;  %v2526_v5 = vld [vmem:[%s3974_s0 + $0x8] sm:$0xff]  ;;  %v57_v6 = vsel %vm47_vm0, %v2517_v2, 0.0  ;;  %v2540_v9 = vld [vmem:[%s3974_s0 + $0x80] sm:$0xff]  ;;  %v2549_v12 = vld [vmem:[%s3974_s0 + $0x98] sm:$0xff] }
   0x3   :  { %55 = vadd.xlane.f32.xlu1 %v54_v3  ;;  %49 = vadd.xlane.f32.xlu0 %v48_v4  ;;  %v51_v7 = vsel %vm47_vm0, %v2526_v5, 0.0  ;;  %v2535_v8 = vld [vmem:[%s3974_s0 + $0x88] sm:$0xff]  ;;  %v96_v11 = vsel %vm47_vm0, %v2540_v9, 0.0  ;;  %v2554_v13 = vld [vmem:[%s3974_s0 + $0x90] sm:$0xff]  ;;  %v105_v14 = vsel %vm47_vm0, %v2549_v12, 0.0  ;;  %v2568_v17 = vld [vmem:[%s3974_s0 + $0x20] sm:$0xff] }
   0x4   :  { %v99_v10 = vsel %vm47_vm0, %v2535_v8, 0.0  ;;  %v102_v15 = vsel %vm47_vm0, %v2554_v13, 0.0  ;;  %v2563_v16 = vld [vmem:[%s3974_s0 + $0x28] sm:$0xff]  ;;  %v60_v19 = vsel %vm47_vm0, %v2568_v17, 0.0  ;;  %v2582_v21 = vld [vmem:[%s3974_s0 + $0xa0] sm:$0xff]  ;;  %v2591_v24 = vld [vmem:[%s3974_s0 + $0x38] sm:$0xff] }
   0x5   :  { %v63_v18 = vsel %vm47_vm0, %v2563_v16, 0.0  ;;  %v2577_v20 = vld [vmem:[%s3974_s0 + $0xa8] sm:$0xff]  ;;  %v108_v23 = vsel %vm47_vm0, %v2582_v21, 0.0  ;;  %v2596_v25 = vld [vmem:[%s3974_s0 + $0x30] sm:$0xff] }
   0x6   :  { %v111_v22 = vsel %vm47_vm0, %v2577_v20, 0.0 }
   0x7   :  { %58 = vadd.xlane.f32.xlu1 %v57_v6  ;;  %52 = vadd.xlane.f32.xlu0 %v51_v7 }
   0xb   :  { %100 = vadd.xlane.f32.xlu1 %v99_v10  ;;  %97 = vadd.xlane.f32.xlu0 %v96_v11 }
   0xf   :  { %106 = vadd.xlane.f32.xlu1 %v105_v14  ;;  %103 = vadd.xlane.f32.xlu0 %v102_v15 }
  0x13   :  { %64 = vadd.xlane.f32.xlu1 %v63_v18  ;;  %61 = vadd.xlane.f32.xlu0 %v60_v19 }
  0x14   :  { %7 = vsyncpa [#allocation4], 0  ;;  %v69_v26 = vsel %vm47_vm0, %v2591_v24, 0.0  ;;  %v66_v27 = vsel %vm47_vm0, %v2596_v25, 0.0  ;;  %v2605_v28 = vld [vmem:[%s3974_s0 + $0xb8] sm:$0xff]  ;;  %v2610_v29 = vld [vmem:[%s3974_s0 + $0xb0] sm:$0xff] }
  0x15   :  { %v117_v30 = vsel %vm47_vm0, %v2605_v28, 0.0  ;;  %v114_v31 = vsel %vm47_vm0, %v2610_v29, 0.0  ;;  %v2619_v32 = vld [vmem:[%s3974_s0 + $0x108] sm:$0xff]  ;;  %v2624_v33 = vld [vmem:[%s3974_s0 + $0x100] sm:$0xff]  ;;  %v2633_v36 = vld [vmem:[%s3974_s0 + $0x118] sm:$0xff]  ;;  %v180_v56 = vsel %vm47_vm0, %v2526_v5, -inf }
  0x16   :  { %v714_v34 = vsel %vm47_vm0, %v2619_v32, 0.0  ;;  %v711_v35 = vsel %vm47_vm0, %v2624_v33, 0.0  ;;  %v2638_v37 = vld [vmem:[%s3974_s0 + $0x110] sm:$0xff]  ;;  %v720_v38 = vsel %vm47_vm0, %v2633_v36, 0.0  ;;  %v2647_v40 = vld [vmem:[%s3974_s0 + $0x188] sm:$0xff]  ;;  %v2652_v41 = vld [vmem:[%s3974_s0 + $0x180] sm:$0xff] }
  0x17   :  { %112 = vadd.xlane.f32.xlu1 %v111_v22  ;;  %109 = vadd.xlane.f32.xlu0 %v108_v23  ;;  %v717_v39 = vsel %vm47_vm0, %v2638_v37, 0.0  ;;  %v762_v42 = vsel %vm47_vm0, %v2647_v40, 0.0  ;;  %v759_v43 = vsel %vm47_vm0, %v2652_v41, 0.0  ;;  %v2661_v44 = vld [vmem:[%s3974_s0 + $0x198] sm:$0xff]  ;;  %v2666_v45 = vld [vmem:[%s3974_s0 + $0x190] sm:$0xff]  ;;  %v2675_v48 = vld [vmem:[%s3974_s0 + $0x48] sm:$0xff] }
  0x18   :  { %v768_v46 = vsel %vm47_vm0, %v2661_v44, 0.0  ;;  %v765_v47 = vsel %vm47_vm0, %v2666_v45, 0.0  ;;  %v2680_v49 = vld [vmem:[%s3974_s0 + $0x40] sm:$0xff]  ;;  %v75_v50 = vsel %vm47_vm0, %v2675_v48, 0.0  ;;  %v2689_v52 = vld [vmem:[%s3974_s0 + $0xc8] sm:$0xff]  ;;  %v177_v57 = vsel %vm47_vm0, %v2512_v1, -inf }
  0x19   :  { %v72_v51 = vsel %vm47_vm0, %v2680_v49, 0.0  ;;  %v2694_v53 = vld [vmem:[%s3974_s0 + $0xc0] sm:$0xff]  ;;  %v123_v54 = vsel %vm47_vm0, %v2689_v52, 0.0  ;;  %v186_v58 = vsel %vm47_vm0, %v2517_v2, -inf  ;;  %v183_v59 = vsel %vm47_vm0, %v2507_v0, -inf  ;;  %v2719_v0 = vld [vmem:[%s3974_s0 + $0x128] sm:$0xff] }
  0x1a   :  { %v120_v55 = vsel %vm47_vm0, %v2694_v53, 0.0  ;;  %v228_v60 = vsel %vm47_vm0, %v2535_v8, -inf  ;;  %v225_v61 = vsel %vm47_vm0, %v2540_v9, -inf  ;;  %v234_v62 = vsel %vm47_vm0, %v2549_v12, -inf  ;;  %v2724_v1 = vld [vmem:[%s3974_s0 + $0x120] sm:$0xff]  ;;  %v2733_v4 = vld [vmem:[%s3974_s0 + $0x1a8] sm:$0xff] }
  0x1b   :  { %70 = vadd.xlane.f32.xlu1 %v69_v26  ;;  %67 = vadd.xlane.f32.xlu0 %v66_v27  ;;  %v231_v63 = vsel %vm47_vm0, %v2554_v13, -inf  ;;  %v726_v2 = vsel %vm47_vm0, %v2719_v0, 0.0  ;;  %v723_v3 = vsel %vm47_vm0, %v2724_v1, 0.0  ;;  %v2738_v5 = vld [vmem:[%s3974_s0 + $0x1a0] sm:$0xff]  ;;  %v774_v6 = vsel %vm47_vm0, %v2733_v4, 0.0  ;;  %v2747_v8 = vld [vmem:[%s3974_s0 + $0x58] sm:$0xff] }
  0x1c   :  { %v771_v7 = vsel %vm47_vm0, %v2738_v5, 0.0  ;;  %v2752_v9 = vld [vmem:[%s3974_s0 + $0x50] sm:$0xff]  ;;  %v81_v10 = vsel %vm47_vm0, %v2747_v8, 0.0  ;;  %v2761_v12 = vld [vmem:[%s3974_s0 + $0xd8] sm:$0xff]  ;;  %v192_v18 = vsel %vm47_vm0, %v2563_v16, -inf  ;;  %v189_v19 = vsel %vm47_vm0, %v2568_v17, -inf }
  0x1d   :  { %v78_v11 = vsel %vm47_vm0, %v2752_v9, 0.0  ;;  %v2766_v13 = vld [vmem:[%s3974_s0 + $0xd0] sm:$0xff]  ;;  %v129_v14 = vsel %vm47_vm0, %v2761_v12, 0.0  ;;  %v240_v22 = vsel %vm47_vm0, %v2577_v20, -inf  ;;  %v237_v23 = vsel %vm47_vm0, %v2582_v21, -inf  ;;  %v2783_v26 = vld [vmem:[%s3974_s0 + $0x138] sm:$0xff] }
  0x1e   :  { %v126_v15 = vsel %vm47_vm0, %v2766_v13, 0.0  ;;  %v2788_v16 = vld [vmem:[%s3974_s0 + $0x130] sm:$0xff]  ;;  %v732_v17 = vsel %vm47_vm0, %v2783_v26, 0.0  ;;  %v2797_v21 = vld [vmem:[%s3974_s0 + $0x1b8] sm:$0xff]  ;;  %vm317_vm1 = vcmask 154712   ;;  %vm454_vm2 = vcmask 1041409  }
  0x1f   :  { %118 = vadd.xlane.f32.xlu1 %v117_v30  ;;  %115 = vadd.xlane.f32.xlu0 %v114_v31  ;;  %v729_v20 = vsel %vm47_vm0, %v2788_v16, 0.0  ;;  %v2802_v27 = vld [vmem:[%s3974_s0 + $0x1b0] sm:$0xff]  ;;  %v780_v30 = vsel %vm47_vm0, %v2797_v21, 0.0  ;;  %vm456_vm3 = vcmask 1042434   ;;  %vm458_vm4 = vcmask 1043459   ;;  %s2478_s8 = smov 127  }
  0x20   :  { %v777_v31 = vsel %vm47_vm0, %v2802_v27, 0.0  ;;  %vm977_vm5 = vcmask 679512   ;;  %vm460_vm6 = vcmask 1044484   ;;  %vm522_vm7 = vcmask 417112   ;;  %s2479_s11 = smov 126   ;;  %s2480_s12 = smov 125  }
  0x21   :  { %vm1175_vm8 = vcmask 941912   ;;  %vm462_vm9 = vcmask 1045509   ;;  %vm464_vm10 = vcmask 1046534   ;;  %vm466_vm11 = vcmask 1047559   ;;  %s2481_s13 = smov 124   ;;  %s2482_s14 = smov 123  }
  0x22   :  { %vm477_vm12 = vcmask 154648   ;;  %vm675_vm13 = vcmask 417048   ;;  %vm1130_vm14 = vcmask 679448   ;;  %vm1328_vm15 = vcmask 941848   ;;  %s2483_s15 = smov 122  }
  0x23   :  { %715 = vadd.xlane.f32.xlu1 %v714_v34  ;;  %712 = vadd.xlane.f32.xlu0 %v711_v35  ;;  %v2811_v34 = vld [vmem:[%s3974_s0 + $0x68] sm:$0xff]  ;;  %v2816_v35 = vld [vmem:[%s3974_s0 + $0x60] sm:$0xff] }
  0x27   :  { %721 = vadd.xlane.f32.xlu1 %v720_v38  ;;  %718 = vadd.xlane.f32.xlu0 %v717_v39  ;;  %v87_v38 = vsel %vm47_vm0, %v2811_v34, 0.0  ;;  %v84_v39 = vsel %vm47_vm0, %v2816_v35, 0.0 }
  0x2b   :  { %763 = vadd.xlane.f32.xlu1 %v762_v42  ;;  %760 = vadd.xlane.f32.xlu0 %v759_v43  ;;  %v2825_v42 = vld [vmem:[%s3974_s0 + $0xe8] sm:$0xff]  ;;  %v2830_v43 = vld [vmem:[%s3974_s0 + $0xe0] sm:$0xff] }
  0x2f   :  { %769 = vadd.xlane.f32.xlu1 %v768_v46  ;;  %766 = vadd.xlane.f32.xlu0 %v765_v47  ;;  %v135_v46 = vsel %vm47_vm0, %v2825_v42, 0.0  ;;  %v132_v47 = vsel %vm47_vm0, %v2830_v43, 0.0 }
  0x33   :  { %76 = vadd.xlane.f32.xlu1 %v75_v50  ;;  %73 = vadd.xlane.f32.xlu0 %v72_v51  ;;  %v198_v50 = vsel %vm47_vm0, %v2591_v24, -inf  ;;  %v195_v51 = vsel %vm47_vm0, %v2596_v25, -inf  ;;  %v2852_v24 = vld [vmem:[%s3974_s0 + $0x140] sm:$0xff] }
  0x37   :  { %124 = vadd.xlane.f32.xlu1 %v123_v54  ;;  %121 = vadd.xlane.f32.xlu0 %v120_v55  ;;  %v246_v54 = vsel %vm47_vm0, %v2605_v28, -inf  ;;  %v243_v55 = vsel %vm47_vm0, %v2610_v29, -inf  ;;  %v735_v28 = vsel %vm47_vm0, %v2852_v24, 0.0  ;;  %v2861_v29 = vld [vmem:[%s3974_s0 + $0x1c8] sm:$0xff] }
  0x3b   :  { %181 = vmax.xlane.f32.xlu1 %v180_v56  ;;  %178 = vmax.xlane.f32.xlu0 %v177_v57  ;;  %v2847_v56 = vld [vmem:[%s3974_s0 + $0x148] sm:$0xff]  ;;  %v2866_v57 = vld [vmem:[%s3974_s0 + $0x1c0] sm:$0xff] }
  0x3c   :  { %v738_v25 = vsel %vm47_vm0, %v2847_v56, 0.0 }
  0x3f   :  { %187 = vmax.xlane.f32.xlu1 %v186_v58  ;;  %184 = vmax.xlane.f32.xlu0 %v183_v59  ;;  %v786_v58 = vsel %vm47_vm0, %v2861_v29, 0.0  ;;  %v783_v59 = vsel %vm47_vm0, %v2866_v57, 0.0 }
  0x43   :  { %229 = vmax.xlane.f32.xlu1 %v228_v60  ;;  %226 = vmax.xlane.f32.xlu0 %v225_v61  ;;  %v842_v60 = vsel %vm47_vm0, %v2619_v32, -inf  ;;  %v839_v61 = vsel %vm47_vm0, %v2624_v33, -inf  ;;  %v887_v32 = vsel %vm47_vm0, %v2652_v41, -inf  ;;  %v896_v33 = vsel %vm47_vm0, %v2661_v44, -inf }
  0x47   :  { %235 = vmax.xlane.f32.xlu1 %v234_v62  ;;  %232 = vmax.xlane.f32.xlu0 %v231_v63  ;;  %v848_v62 = vsel %vm47_vm0, %v2633_v36, -inf  ;;  %v845_v63 = vsel %vm47_vm0, %v2638_v37, -inf  ;;  %v893_v36 = vsel %vm47_vm0, %v2666_v45, -inf  ;;  %v2893_v37 = vld [vmem:[%s3974_s0 + $0x78] sm:$0xff] }
  0x4b   :  { %727 = vadd.xlane.f32.xlu1 %v726_v2  ;;  %724 = vadd.xlane.f32.xlu0 %v723_v3  ;;  %v305_v2 = vlaneseq  ;;  %v890_v3 = vsel %vm47_vm0, %v2647_v40, -inf  ;;  %v2898_v40 = vld [vmem:[%s3974_s0 + $0x70] sm:$0xff] }
  0x4f   :  { %775 = vadd.xlane.f32.xlu1 %v774_v6  ;;  %772 = vadd.xlane.f32.xlu0 %v771_v7  ;;  %v2884_v6 = vand.u32 127, %v305_v2  ;;  %v2901_v7 = vshrl.u32 %v305_v2, 7 }
  0x51   :  { %v307_v41 = vadd.s32 4294967293, %v2884_v6  ;;  %v312_v44 = vadd.s32 4294967285, %v2884_v6 }
  0x53   :  { %82 = vadd.xlane.f32.xlu1 %v81_v10  ;;  %79 = vadd.xlane.f32.xlu0 %v78_v11  ;;  %v93_v11 = vsel %vm47_vm0, %v2893_v37, 0.0 }
  0x57   :  { %130 = vadd.xlane.f32.xlu1 %v129_v14  ;;  %127 = vadd.xlane.f32.xlu0 %v126_v15  ;;  %v90_v14 = vsel %vm47_vm0, %v2898_v40, 0.0  ;;  %v2911_v15 = vld [vmem:[%s3974_s0 + $0xf8] sm:$0xff] }
  0x5b   :  { %193 = vmax.xlane.f32.xlu1 %v192_v18  ;;  %190 = vmax.xlane.f32.xlu0 %v189_v19  ;;  %v2916_v18 = vld [vmem:[%s3974_s0 + $0xf0] sm:$0xff]  ;;  %v2919_v19 = vsub.s32 %v307_v41, %v2901_v7 }
  0x5f   :  { %241 = vmax.xlane.f32.xlu1 %v240_v22  ;;  %238 = vmax.xlane.f32.xlu0 %v237_v23 }
  0x63   :  { %733 = vadd.xlane.f32.xlu1 %v732_v17  ;;  %730 = vadd.xlane.f32.xlu0 %v729_v20  ;;  %v2922_v17 = vsub.s32 %v312_v44, %v2901_v7 }
  0x67   :  { %781 = vadd.xlane.f32.xlu1 %v780_v30  ;;  %778 = vadd.xlane.f32.xlu0 %v777_v31  ;;  %v141_v31 = vsel %vm47_vm0, %v2911_v15, 0.0 }
  0x6b   :  { %88 = vadd.xlane.f32.xlu1 %v87_v38  ;;  %85 = vadd.xlane.f32.xlu0 %v84_v39  ;;  %v138_v38 = vsel %vm47_vm0, %v2916_v18, 0.0 }
  0x6f   :  { %136 = vadd.xlane.f32.xlu1 %v135_v46  ;;  %133 = vadd.xlane.f32.xlu0 %v132_v47 }
  0x73   :  { %199 = vmax.xlane.f32.xlu1 %v198_v50  ;;  %196 = vmax.xlane.f32.xlu0 %v195_v51 }
  0x77   :  { %247 = vmax.xlane.f32.xlu1 %v246_v54  ;;  %244 = vmax.xlane.f32.xlu0 %v243_v55 }
  0x7b   :  { %739 = vadd.xlane.f32.xlu1 %v738_v25  ;;  %736 = vadd.xlane.f32.xlu0 %v735_v28  ;;  %v204_v28 = vsel %vm47_vm0, %v2675_v48, -inf  ;;  %v252_v48 = vsel %vm47_vm0, %v2689_v52, -inf }
  0x7f   :  { %787 = vadd.xlane.f32.xlu1 %v786_v58  ;;  %784 = vadd.xlane.f32.xlu0 %v783_v59  ;;  %v201_v58 = vsel %vm47_vm0, %v2680_v49, -inf  ;;  %v249_v49 = vsel %vm47_vm0, %v2694_v53, -inf }
  0x83   :  { %843 = vmax.xlane.f32.xlu1 %v842_v60  ;;  %840 = vmax.xlane.f32.xlu0 %v839_v61 }
  0x87   :  { %849 = vmax.xlane.f32.xlu1 %v848_v62  ;;  %846 = vmax.xlane.f32.xlu0 %v845_v63 }
  0x8b   :  { %891 = vmax.xlane.f32.xlu1 %v890_v3  ;;  %888 = vmax.xlane.f32.xlu0 %v887_v32 }
  0x8f   :  { %897 = vmax.xlane.f32.xlu1 %v896_v33  ;;  %894 = vmax.xlane.f32.xlu0 %v893_v36 }
  0x90   :  { %v56_v10 = vpop.xlane.xlu1 %55  ;;  %v50_v45 = vpop.xlane.xlu0 %49 }
  0x91   :  { %v147_v22 = vmul.f32 0.015625, %v56_v10  ;;  %v145_v23 = vmul.f32 0.015625, %v50_v45  ;;  %v2949_v10 = vld [vmem:[%s3974_s0 + $0x158] sm:$0xff]  ;;  %v2954_v45 = vld [vmem:[%s3974_s0 + $0x150] sm:$0xff] }
  0x93   :  { %94 = vadd.xlane.f32.xlu1 %v93_v11  ;;  %91 = vadd.xlane.f32.xlu0 %v90_v14  ;;  %v322_v47 = vrot.slane %v147_v22, %v2919_v19  ;;  %v311_v50 = vrot.slane %v145_v23, %v2919_v19  ;;  %v744_v22 = vsel %vm47_vm0, %v2949_v10, 0.0  ;;  %v741_v23 = vsel %vm47_vm0, %v2954_v45, 0.0 }
  0x94   :  { %v59_v20 = vpop.xlane.xlu1 %58  ;;  %v53_v30 = vpop.xlane.xlu0 %52 }
  0x95   :  { %v148_v39 = vmul.f32 0.015625, %v59_v20  ;;  %v146_v46 = vmul.f32 0.015625, %v53_v30 }
  0x97   :  { %v326_v51 = vrot.slane %v148_v39, %v2922_v17  ;;  %v316_v54 = vrot.slane %v146_v46, %v2922_v17  ;;  %142 = vadd.xlane.f32.xlu1 %v141_v31  ;;  %139 = vadd.xlane.f32.xlu0 %v138_v38  ;;  %v2966_v38 = vld [vmem:[%s3974_s0 + $0x1d8] sm:$0xff]  ;;  %v2971_v39 = vld [vmem:[%s3974_s0 + $0x1d0] sm:$0xff] }
  0x98   :  { %v101_v55 = vpop.xlane.xlu1 %100  ;;  %v98_v25 = vpop.xlane.xlu0 %97 }
  0x99   :  { %v327_v59 = vsel %vm317_vm1, %v326_v51, %v322_v47  ;;  %v318_v60 = vsel %vm317_vm1, %v316_v54, %v311_v50  ;;  %v162_v61 = vmul.f32 0.015625, %v101_v55  ;;  %v161_v62 = vmul.f32 0.015625, %v98_v25 }
  0x9a   :  { %v455_v63 = vsel %vm454_vm2, %v327_v59, %v318_v60  ;;  %v792_v55 = vsel %vm47_vm0, %v2966_v38, 0.0  ;;  %v789_v25 = vsel %vm47_vm0, %v2971_v39, 0.0 }
  0x9b   :  { %v389_v2 = vrot.slane %v162_v61, %v2922_v17  ;;  %v385_v3 = vrot.slane %v161_v62, %v2919_v19  ;;  %205 = vmax.xlane.f32.xlu1 %v204_v28  ;;  %202 = vmax.xlane.f32.xlu0 %v201_v58  ;;  %v2477_v61 = vmov 0.0  }
  0x9c   :  { %v107_v32 = vpop.xlane.xlu1 %106  ;;  %v104_v33 = vpop.xlane.xlu0 %103  ;;  %12 = vst [vmem:[#allocation2] sm:$0xff] %v2477_v61  ;;  %13 = vst [vmem:[#allocation2 + $0x8] sm:$0xff] %v2477_v61 }
  0x9d   :  { %v390_v36 = vsel %vm317_vm1, %v389_v2, %v385_v3  ;;  %v164_v41 = vmul.f32 0.015625, %v107_v32  ;;  %v163_v44 = vmul.f32 0.015625, %v104_v33  ;;  %14 = vst [vmem:[#allocation2 + $0x10] sm:$0x3f] %v2477_v61  ;;  %v854_v33 = vsel %vm47_vm0, %v2719_v0, -inf }
  0x9e   :  { %v967_v0 = vadd.s32 4294967229, %v2884_v6 }
  0x9f   :  { %v398_v11 = vrot.slane %v164_v41, %v2922_v17  ;;  %v394_v52 = vrot.slane %v163_v44, %v2919_v19  ;;  %253 = vmax.xlane.f32.xlu1 %v252_v48  ;;  %250 = vmax.xlane.f32.xlu0 %v249_v49  ;;  %v851_v48 = vsel %vm47_vm0, %v2724_v1, -inf  ;;  %v972_v44 = vadd.s32 4294967221, %v2884_v6 }
  0xa0   :  { %v65_v53 = vpop.xlane.xlu1 %64  ;;  %v62_v14 = vpop.xlane.xlu0 %61  ;;  %v902_v1 = vsel %vm47_vm0, %v2733_v4, -inf  ;;  %v3008_v4 = vsub.s32 %v967_v0, %v2901_v7 }
  0xa1   :  { %v399_v20 = vsel %vm317_vm1, %v398_v11, %v394_v52  ;;  %v150_v30 = vmul.f32 0.015625, %v65_v53  ;;  %v149_v31 = vmul.f32 0.015625, %v62_v14 }
  0xa2   :  { %v468_v46 = vsel %vm454_vm2, %v399_v20, %v390_v36 }
  0xa3   :  { %v335_v47 = vrot.slane %v150_v30, %v2922_v17  ;;  %v331_v50 = vrot.slane %v149_v31, %v2919_v19  ;;  %745 = vadd.xlane.f32.xlu1 %v744_v22  ;;  %742 = vadd.xlane.f32.xlu0 %v741_v23  ;;  %v899_v22 = vsel %vm47_vm0, %v2738_v5, -inf }
  0xa4   :  { %v113_v51 = vpop.xlane.xlu1 %112  ;;  %v110_v54 = vpop.xlane.xlu0 %109 }
  0xa5   :  { %v336_v28 = vsel %vm317_vm1, %v335_v47, %v331_v50  ;;  %v166_v58 = vmul.f32 0.015625, %v113_v51  ;;  %v165_v59 = vmul.f32 0.015625, %v110_v54  ;;  %v210_v54 = vsel %vm47_vm0, %v2747_v8, -inf }
  0xa6   :  { %v457_v60 = vsel %vm456_vm3, %v336_v28, %v455_v63  ;;  %v258_v8 = vsel %vm47_vm0, %v2761_v12, -inf }
  0xa7   :  { %v407_v62 = vrot.slane %v166_v58, %v2922_v17  ;;  %v403_v2 = vrot.slane %v165_v59, %v2919_v19  ;;  %793 = vadd.xlane.f32.xlu1 %v792_v55  ;;  %790 = vadd.xlane.f32.xlu0 %v789_v25  ;;  %v207_v55 = vsel %vm47_vm0, %v2752_v9, -inf  ;;  %v255_v9 = vsel %vm47_vm0, %v2766_v13, -inf }
  0xa8   :  { %v71_v3 = vpop.xlane.xlu1 %70  ;;  %v68_v32 = vpop.xlane.xlu0 %67 }
  0xa9   :  { %v408_v63 = vsel %vm317_vm1, %v407_v62, %v403_v2  ;;  %v152_v49 = vmul.f32 0.015625, %v71_v3  ;;  %v151_v36 = vmul.f32 0.015625, %v68_v32 }
  0xaa   :  { %v469_v41 = vsel %vm456_vm3, %v408_v63, %v468_v46  ;;  %v3003_v46 = vsub.s32 %v972_v44, %v2901_v7  ;;  %v3033_v63 = vld [vmem:[%s3974_s0 + $0x160] sm:$0xff] }
  0xab   :  { %v344_v11 = vrot.slane %v152_v49, %v2922_v17  ;;  %v340_v52 = vrot.slane %v151_v36, %v2919_v19  ;;  %855 = vmax.xlane.f32.xlu1 %v854_v33  ;;  %852 = vmax.xlane.f32.xlu0 %v851_v48  ;;  %v3028_v48 = vld [vmem:[%s3974_s0 + $0x168] sm:$0xff]  ;;  %v747_v44 = vsel %vm47_vm0, %v3033_v63, 0.0 }
  0xac   :  { %v119_v53 = vpop.xlane.xlu1 %118  ;;  %v116_v14 = vpop.xlane.xlu0 %115 }
  0xad   :  { %v345_v23 = vsel %vm317_vm1, %v344_v11, %v340_v52  ;;  %v168_v20 = vmul.f32 0.015625, %v119_v53  ;;  %v167_v30 = vmul.f32 0.015625, %v116_v14  ;;  %v3045_v53 = vld [vmem:[%s3974_s0 + $0x1e8] sm:$0xff]  ;;  %v3050_v14 = vld [vmem:[%s3974_s0 + $0x1e0] sm:$0xff] }
  0xae   :  { %v3000_v31 = vsel %vm458_vm4, %v345_v23, %v457_v60 }
  0xaf   :  { %v416_v47 = vrot.slane %v168_v20, %v2922_v17  ;;  %v412_v50 = vrot.slane %v167_v30, %v2919_v19  ;;  %903 = vmax.xlane.f32.xlu1 %v902_v1  ;;  %900 = vmax.xlane.f32.xlu0 %v899_v22 }
  0xb0   :  { %v716_v5 = vpop.xlane.xlu1 %715  ;;  %v713_v51 = vpop.xlane.xlu0 %712 }
  0xb1   :  { %v417_v25 = vsel %vm317_vm1, %v416_v47, %v412_v50  ;;  %v808_v28 = vmul.f32 0.015625, %v716_v5  ;;  %v807_v58 = vmul.f32 0.015625, %v713_v51  ;;  %v798_v47 = vsel %vm47_vm0, %v3045_v53, 0.0 }
  0xb2   :  { %v3016_v59 = vsel %vm458_vm4, %v417_v25, %v469_v41  ;;  %v750_v41 = vsel %vm47_vm0, %v3028_v48, 0.0  ;;  %v795_v50 = vsel %vm47_vm0, %v3050_v14, 0.0 }
  0xb3   :  { %v976_v60 = vrot.slane %v808_v28, %v3003_v46  ;;  %v971_v61 = vrot.slane %v807_v58, %v3008_v4  ;;  %211 = vmax.xlane.f32.xlu1 %v210_v54  ;;  %208 = vmax.xlane.f32.xlu0 %v207_v55 }
  0xb4   :  { %v722_v62 = vpop.xlane.xlu1 %721  ;;  %v719_v2 = vpop.xlane.xlu0 %718 }
  0xb5   :  { %v978_v3 = vsel %vm977_vm5, %v976_v60, %v971_v61  ;;  %v810_v32 = vmul.f32 0.015625, %v722_v62  ;;  %v809_v33 = vmul.f32 0.015625, %v719_v2  ;;  %v860_v60 = vsel %vm47_vm0, %v2783_v26, -inf }
  0xb6   :  { %v857_v61 = vsel %vm47_vm0, %v2788_v16, -inf  ;;  %v517_v62 = vadd.s32 4294967253, %v2884_v6 }
  0xb7   :  { %v986_v49 = vrot.slane %v810_v32, %v3003_v46  ;;  %v982_v12 = vrot.slane %v809_v33, %v3008_v4  ;;  %259 = vmax.xlane.f32.xlu1 %v258_v8  ;;  %256 = vmax.xlane.f32.xlu0 %v255_v9 }
  0xb8   :  { %v764_v13 = vpop.xlane.xlu1 %763  ;;  %v761_v36 = vpop.xlane.xlu0 %760 }
  0xb9   :  { %v987_v11 = vsel %vm977_vm5, %v986_v49, %v982_v12  ;;  %v824_v52 = vmul.f32 0.015625, %v764_v13  ;;  %v823_v0 = vmul.f32 0.015625, %v761_v36  ;;  %v908_v12 = vsel %vm47_vm0, %v2797_v21, -inf }
  0xba   :  { %v3053_v1 = vsel %vm454_vm2, %v987_v11, %v978_v3  ;;  %v512_v3 = vadd.s32 4294967261, %v2884_v6  ;;  %v905_v13 = vsel %vm47_vm0, %v2802_v27, -inf  ;;  %v3081_v36 = vsub.s32 %v517_v62, %v2901_v7 }
  0xbb   :  { %v1049_v22 = vrot.slane %v824_v52, %v3003_v46  ;;  %v1045_v23 = vrot.slane %v823_v0, %v3008_v4  ;;  %751 = vadd.xlane.f32.xlu1 %v750_v41  ;;  %748 = vadd.xlane.f32.xlu0 %v747_v44 }
  0xbc   :  { %v770_v20 = vpop.xlane.xlu1 %769  ;;  %v767_v30 = vpop.xlane.xlu0 %766  ;;  %v3085_v52 = vsub.s32 %v512_v3, %v2901_v7 }
  0xbd   :  { %v1050_v5 = vsel %vm977_vm5, %v1049_v22, %v1045_v23  ;;  %v826_v51 = vmul.f32 0.015625, %v770_v20  ;;  %v825_v54 = vmul.f32 0.015625, %v767_v30  ;;  %v216_v20 = vsel %vm47_vm0, %v2811_v34, -inf }
  0xbe   :  { %v213_v30 = vsel %vm47_vm0, %v2816_v35, -inf  ;;  %v264_v35 = vsel %vm47_vm0, %v2825_v42, -inf }
  0xbf   :  { %v1058_v55 = vrot.slane %v826_v51, %v3003_v46  ;;  %v1054_v25 = vrot.slane %v825_v54, %v3008_v4  ;;  %799 = vadd.xlane.f32.xlu1 %v798_v47  ;;  %796 = vadd.xlane.f32.xlu0 %v795_v50 }
  0xc0   :  { %v77_v28 = vpop.xlane.xlu1 %76  ;;  %v74_v58 = vpop.xlane.xlu0 %73 }
  0xc1   :  { %v1059_v2 = vsel %vm977_vm5, %v1058_v55, %v1054_v25  ;;  %v154_v8 = vmul.f32 0.015625, %v77_v28  ;;  %v153_v9 = vmul.f32 0.015625, %v74_v58  ;;  %v261_v55 = vsel %vm47_vm0, %v2830_v43, -inf  ;;  %v3123_v25 = vld [vmem:[%s3974_s0 + $0x170] sm:$0xff] }
  0xc2   :  { %v3072_v32 = vsel %vm454_vm2, %v1059_v2, %v1050_v5  ;;  %v753_v43 = vsel %vm47_vm0, %v3123_v25, 0.0 }
  0xc3   :  { %v353_v33 = vrot.slane %v154_v8, %v2922_v17  ;;  %v349_v49 = vrot.slane %v153_v9, %v2919_v19  ;;  %861 = vmax.xlane.f32.xlu1 %v860_v60  ;;  %858 = vmax.xlane.f32.xlu0 %v857_v61  ;;  %v3136_v60 = vld [vmem:[%s3974_s0 + $0x1f8] sm:$0xff]  ;;  %v3141_v61 = vld [vmem:[%s3974_s0 + $0x1f0] sm:$0xff] }
  0xc4   :  { %v125_v26 = vpop.xlane.xlu1 %124  ;;  %v122_v16 = vpop.xlane.xlu0 %121  ;;  %v804_v8 = vsel %vm47_vm0, %v3136_v60, 0.0  ;;  %v801_v9 = vsel %vm47_vm0, %v3141_v61, 0.0 }
  0xc5   :  { %v354_v41 = vsel %vm317_vm1, %v353_v33, %v349_v49  ;;  %v170_v44 = vmul.f32 0.015625, %v125_v26  ;;  %v169_v11 = vmul.f32 0.015625, %v122_v16  ;;  %v866_v49 = vsel %vm47_vm0, %v2847_v56, -inf }
  0xc6   :  { %v3089_v0 = vsel %vm460_vm6, %v354_v41, %v3000_v31  ;;  %v863_v26 = vsel %vm47_vm0, %v2852_v24, -inf  ;;  %v911_v41 = vsel %vm47_vm0, %v2866_v57, -inf  ;;  %v222_v56 = vsel %vm47_vm0, %v2893_v37, -inf }
  0xc7   :  { %v425_v22 = vrot.slane %v170_v44, %v2922_v17  ;;  %v421_v21 = vrot.slane %v169_v11, %v2919_v19  ;;  %909 = vmax.xlane.f32.xlu1 %v908_v12  ;;  %906 = vmax.xlane.f32.xlu0 %v905_v13  ;;  %v914_v13 = vsel %vm47_vm0, %v2861_v29, -inf  ;;  %v219_v24 = vsel %vm47_vm0, %v2898_v40, -inf }
  0xc8   :  { %v182_v27 = vpop.xlane.xlu1 %181  ;;  %v179_v23 = vpop.xlane.xlu0 %178  ;;  %v270_v57 = vsel %vm47_vm0, %v2911_v15, -inf  ;;  %v872_v37 = vsel %vm47_vm0, %v2949_v10, -inf  ;;  %v869_v40 = vsel %vm47_vm0, %v2954_v45, -inf  ;;  %v920_v15 = vsel %vm47_vm0, %v2966_v38, -inf }
  0xc9   :  { %v426_v47 = vsel %vm317_vm1, %v425_v22, %v421_v21  ;;  %v521_v31 = vrot.slane %v182_v27, %v3081_v36  ;;  %v516_v50 = vrot.slane %v179_v23, %v3085_v52  ;;  %v267_v21 = vsel %vm47_vm0, %v2916_v18, -inf }
  0xca   :  { %v3102_v5 = vsel %vm460_vm6, %v426_v47, %v3016_v59  ;;  %v3118_v59 = vld [vmem:[%s3974_s0 + $0x178] sm:$0xff]  ;;  %v917_v18 = vsel %vm47_vm0, %v2971_v39, -inf  ;;  %v878_v45 = vsel %vm47_vm0, %v3028_v48, -inf }
  0xcb   :  { %v3105_v51 = vsel %vm522_vm7, %v521_v31, %v516_v50  ;;  %217 = vmax.xlane.f32.xlu1 %v216_v20  ;;  %214 = vmax.xlane.f32.xlu0 %v213_v30  ;;  %v756_v42 = vsel %vm47_vm0, %v3118_v59, 0.0 }
  0xcc   :  { %v3107_v54 = vpop.xlane.xlu1 %187  ;;  %v3109_v34 = vpop.xlane.xlu0 %184 }
  0xcf   :  { %265 = vmax.xlane.f32.xlu1 %v264_v35  ;;  %262 = vmax.xlane.f32.xlu0 %v261_v55  ;;  %v875_v35 = vsel %vm47_vm0, %v3033_v63, -inf }
  0xd0   :  { %v3125_v28 = vpop.xlane.xlu1 %229  ;;  %v3127_v58 = vpop.xlane.xlu0 %226 }
  0xd3   :  { %757 = vadd.xlane.f32.xlu1 %v756_v42  ;;  %754 = vadd.xlane.f32.xlu0 %v753_v43  ;;  %v926_v43 = vsel %vm47_vm0, %v3045_v53, -inf  ;;  %v884_v53 = vsel %vm47_vm0, %v3118_v59, -inf }
  0xd4   :  { %v3143_v62 = vpop.xlane.xlu1 %235  ;;  %v3145_v2 = vpop.xlane.xlu0 %232 }
  0xd7   :  { %805 = vadd.xlane.f32.xlu1 %v804_v8  ;;  %802 = vadd.xlane.f32.xlu0 %v801_v9  ;;  %v923_v8 = vsel %vm47_vm0, %v3050_v14, -inf  ;;  %v881_v14 = vsel %vm47_vm0, %v3123_v25, -inf }
  0xd8   :  { %v3151_v3 = vpop.xlane.xlu1 %727  ;;  %v3153_v33 = vpop.xlane.xlu0 %724 }
  0xdb   :  { %867 = vmax.xlane.f32.xlu1 %v866_v49  ;;  %864 = vmax.xlane.f32.xlu0 %v863_v26 }
  0xdc   :  { %v776_v16 = vpop.xlane.xlu1 %775  ;;  %v773_v12 = vpop.xlane.xlu0 %772 }
  0xdd   :  { %v828_v47 = vmul.f32 0.015625, %v776_v16  ;;  %v827_v31 = vmul.f32 0.015625, %v773_v12 }
  0xdf   :  { %915 = vmax.xlane.f32.xlu1 %v914_v13  ;;  %912 = vmax.xlane.f32.xlu0 %v911_v41  ;;  %v1067_v55 = vrot.slane %v828_v47, %v3003_v46  ;;  %v1063_v42 = vrot.slane %v827_v31, %v3008_v4 }
  0xe0   :  { %v3163_v44 = vpop.xlane.xlu1 %82  ;;  %v3165_v11 = vpop.xlane.xlu0 %79 }
  0xe1   :  { %v1068_v48 = vsel %vm977_vm5, %v1067_v55, %v1063_v42 }
  0xe2   :  { %v1122_v13 = vsel %vm456_vm3, %v1068_v48, %v3072_v32  ;;  %v1170_v48 = vadd.s32 4294967189, %v2884_v6 }
  0xe3   :  { %223 = vmax.xlane.f32.xlu1 %v222_v56  ;;  %220 = vmax.xlane.f32.xlu0 %v219_v24  ;;  %v531_v24 = vrot.slane %v3107_v54, %v3081_v36 }
  0xe4   :  { %v3171_v22 = vpop.xlane.xlu1 %130  ;;  %v3173_v29 = vpop.xlane.xlu0 %127 }
  0xe7   :  { %271 = vmax.xlane.f32.xlu1 %v270_v57  ;;  %268 = vmax.xlane.f32.xlu0 %v267_v21  ;;  %v527_v57 = vrot.slane %v3109_v34, %v3085_v52 }
  0xe8   :  { %v194_v27 = vpop.xlane.xlu1 %193  ;;  %v191_v23 = vpop.xlane.xlu0 %190 }
  0xe9   :  { %v540_v59 = vrot.slane %v194_v27, %v3081_v36  ;;  %v536_v25 = vrot.slane %v191_v23, %v3085_v52  ;;  %v532_v54 = vsel %vm522_vm7, %v531_v24, %v527_v57  ;;  %v812_v23 = vmul.f32 0.015625, %v3151_v3 }
  0xeb   :  { %873 = vmax.xlane.f32.xlu1 %v872_v37  ;;  %870 = vmax.xlane.f32.xlu0 %v869_v40  ;;  %v932_v37 = vsel %vm47_vm0, %v3136_v60, -inf  ;;  %v929_v40 = vsel %vm47_vm0, %v3141_v61, -inf  ;;  %v541_v34 = vsel %vm522_vm7, %v540_v59, %v536_v25  ;;  %v659_v60 = vsel %vm454_vm2, %v532_v54, %v3105_v51 }
  0xec   :  { %v3183_v20 = vpop.xlane.xlu1 %241  ;;  %v3185_v30 = vpop.xlane.xlu0 %238  ;;  %vm1354_vm0 = vcmask 1046528  }
  0xef   :  { %921 = vmax.xlane.f32.xlu1 %v920_v15  ;;  %918 = vmax.xlane.f32.xlu0 %v917_v18  ;;  %v811_v18 = vmul.f32 0.015625, %v3153_v33  ;;  %v995_v33 = vrot.slane %v812_v23, %v3003_v46 }
  0xf0   :  { %v734_v10 = vpop.xlane.xlu1 %733  ;;  %v731_v50 = vpop.xlane.xlu0 %730 }
  0xf1   :  { %v814_v61 = vmul.f32 0.015625, %v734_v10 }
  0xf3   :  { %879 = vmax.xlane.f32.xlu1 %v878_v45  ;;  %876 = vmax.xlane.f32.xlu0 %v875_v35  ;;  %v813_v45 = vmul.f32 0.015625, %v731_v50  ;;  %v660_v35 = vsel %vm456_vm3, %v541_v34, %v659_v60  ;;  %v1004_v51 = vrot.slane %v814_v61, %v3003_v46 }
  0xf4   :  { %v782_v38 = vpop.xlane.xlu1 %781  ;;  %v779_v39 = vpop.xlane.xlu0 %778 }
  0xf5   :  { %v830_v9 = vmul.f32 0.015625, %v782_v38  ;;  %v829_v49 = vmul.f32 0.015625, %v779_v39  ;;  %v991_v39 = vrot.slane %v811_v18, %v3008_v4  ;;  %v1000_v10 = vrot.slane %v813_v45, %v3008_v4 }
  0xf7   :  { %v1076_v63 = vrot.slane %v830_v9, %v3003_v46  ;;  %v1072_v26 = vrot.slane %v829_v49, %v3008_v4  ;;  %927 = vmax.xlane.f32.xlu1 %v926_v43  ;;  %924 = vmax.xlane.f32.xlu0 %v923_v8 }
  0xf8   :  { %v3204_v16 = vpop.xlane.xlu1 %88  ;;  %v3206_v12 = vpop.xlane.xlu0 %85 }
  0xf9   :  { %v1077_v41 = vsel %vm977_vm5, %v1076_v63, %v1072_v26  ;;  %v1165_v63 = vadd.s32 4294967197, %v2884_v6  ;;  %v996_v26 = vsel %vm977_vm5, %v995_v33, %v991_v39 }
  0xfa   :  { %v3216_v56 = vsel %vm458_vm4, %v1077_v41, %v1122_v13  ;;  %v1005_v13 = vsel %vm977_vm5, %v1004_v51, %v1000_v10  ;;  %v1115_v57 = vsel %vm456_vm3, %v996_v26, %v3053_v1  ;;  %v156_v51 = vmul.f32 0.015625, %v3163_v44 }
  0xfb   :  { %885 = vmax.xlane.f32.xlu1 %v884_v53  ;;  %882 = vmax.xlane.f32.xlu0 %v881_v14  ;;  %v3266_v6 = vsub.s32 %v1165_v63, %v2901_v7  ;;  %v172_v26 = vmul.f32 0.015625, %v3171_v22 }
  0xfc   :  { %v3224_v21 = vpop.xlane.xlu1 %136  ;;  %v3226_v32 = vpop.xlane.xlu0 %133  ;;  %v362_v44 = vrot.slane %v156_v51, %v2922_v17 }
  0xfd   :  { %v173_v22 = vmul.f32 0.015625, %v3226_v32 }
  0xff   :  { %933 = vmax.xlane.f32.xlu1 %v932_v37  ;;  %930 = vmax.xlane.f32.xlu0 %v929_v40  ;;  %v3263_v37 = vsub.s32 %v1170_v48, %v2901_v7  ;;  %v1116_v40 = vsel %vm458_vm4, %v1005_v13, %v1115_v57  ;;  %v157_v48 = vmul.f32 0.015625, %v3206_v12  ;;  %v174_v57 = vmul.f32 0.015625, %v3224_v21 }
 0x100   :  { %v200_v15 = vpop.xlane.xlu1 %199  ;;  %v197_v27 = vpop.xlane.xlu0 %196 }
 0x101   :  { %v549_v47 = vrot.slane %v200_v15, %v3081_v36  ;;  %v545_v31 = vrot.slane %v197_v27, %v3085_v52  ;;  %v367_v12 = vrot.slane %v157_v48, %v2919_v19  ;;  %v443_v32 = vrot.slane %v174_v57, %v2922_v17 }
 0x103   :  { %v550_v55 = vsel %vm522_vm7, %v549_v47, %v545_v31 }
 0x104   :  { %v3243_v42 = vsel %vm458_vm4, %v550_v55, %v660_v35  ;;  %v248_v38 = vpop.xlane.xlu1 %247  ;;  %v245_v3 = vpop.xlane.xlu0 %244 }
 0x105   :  { %v621_v43 = vrot.slane %v248_v38, %v3081_v36  ;;  %v617_v8 = vrot.slane %v245_v3, %v3085_v52 }
 0x107   :  { %v3252_v50 = vsel %vm522_vm7, %v621_v43, %v617_v8 }
 0x108   :  { %v740_v9 = vpop.xlane.xlu1 %739  ;;  %v737_v49 = vpop.xlane.xlu0 %736 }
 0x109   :  { %v816_v53 = vmul.f32 0.015625, %v740_v9  ;;  %v815_v14 = vmul.f32 0.015625, %v737_v49  ;;  %v158_v49 = vmul.f32 0.015625, %v3204_v16 }
 0x10b   :  { %v1013_v41 = vrot.slane %v816_v53, %v3003_v46  ;;  %v1009_v24 = vrot.slane %v815_v14, %v3008_v4  ;;  %v171_v53 = vmul.f32 0.015625, %v3173_v29  ;;  %v371_v16 = vrot.slane %v158_v49, %v2922_v17 }
 0x10c   :  { %v788_v59 = vpop.xlane.xlu1 %787  ;;  %v785_v25 = vpop.xlane.xlu0 %784 }
 0x10d   :  { %v1014_v54 = vsel %vm977_vm5, %v1013_v41, %v1009_v24  ;;  %v832_v34 = vmul.f32 0.015625, %v788_v59  ;;  %v831_v15 = vmul.f32 0.015625, %v785_v25  ;;  %v434_v59 = vrot.slane %v172_v26, %v2922_v17 }
 0x10e   :  { %v3271_v27 = vsel %vm460_vm6, %v1014_v54, %v1116_v40  ;;  %v430_v25 = vrot.slane %v171_v53, %v2919_v19  ;;  %v372_v21 = vsel %vm317_vm1, %v371_v16, %v367_v12 }
 0x10f   :  { %v1085_v23 = vrot.slane %v832_v34, %v3003_v46  ;;  %v1081_v1 = vrot.slane %v831_v15, %v3008_v4 }
 0x110   :  { %v844_v18 = vpop.xlane.xlu1 %843  ;;  %v841_v47 = vpop.xlane.xlu0 %840 }
 0x111   :  { %v1086_v31 = vsel %vm977_vm5, %v1085_v23, %v1081_v1  ;;  %v1174_v7 = vrot.slane %v844_v18, %v3263_v37  ;;  %v1169_v60 = vrot.slane %v841_v47, %v3266_v6  ;;  %v439_v18 = vrot.slane %v173_v22, %v2919_v19 }
 0x112   :  { %v3280_v61 = vsel %vm460_vm6, %v1086_v31, %v3216_v56  ;;  %v155_v56 = vmul.f32 0.015625, %v3165_v11 }
 0x113   :  { %v1176_v45 = vsel %vm1175_vm8, %v1174_v7, %v1169_v60  ;;  %v435_v60 = vsel %vm317_vm1, %v434_v59, %v430_v25  ;;  %v444_v51 = vsel %vm317_vm1, %v443_v32, %v439_v18 }
 0x114   :  { %v850_v35 = vpop.xlane.xlu1 %849  ;;  %v847_v55 = vpop.xlane.xlu0 %846  ;;  %v358_v11 = vrot.slane %v155_v56, %v2919_v19  ;;  %v612_v56 = vrot.slane %v3183_v20, %v3081_v36  ;;  %v472_v48 = vsel %vm462_vm9, %v435_v60, %v3102_v5 }
 0x115   :  { %v1184_v38 = vrot.slane %v850_v35, %v3263_v37  ;;  %v1180_v3 = vrot.slane %v847_v55, %v3266_v6  ;;  %v473_v26 = vsel %vm464_vm10, %v444_v51, %v472_v48 }
 0x116   :  { %v363_v15 = vsel %vm317_vm1, %v362_v44, %v358_v11 }
 0x117   :  { %v1185_v33 = vsel %vm1175_vm8, %v1184_v38, %v1180_v3  ;;  %v463_v7 = vsel %vm462_vm9, %v363_v15, %v3089_v0 }
 0x118   :  { %v3287_v39 = vsel %vm454_vm2, %v1185_v33, %v1176_v45  ;;  %v892_v43 = vpop.xlane.xlu1 %891  ;;  %v889_v8 = vpop.xlane.xlu0 %888  ;;  %v465_v55 = vsel %vm464_vm10, %v372_v21, %v463_v7 }
 0x119   :  { %v1247_v10 = vrot.slane %v892_v43, %v3263_v37  ;;  %v1243_v9 = vrot.slane %v889_v8, %v3266_v6  ;;  %v603_v43 = vrot.slane %v3143_v62, %v3081_v36  ;;  %v599_v8 = vrot.slane %v3145_v2, %v3085_v52 }
 0x11a   :  { %v594_v62 = vrot.slane %v3125_v28, %v3081_v36  ;;  %v590_v2 = vrot.slane %v3127_v58, %v3085_v52 }
 0x11b   :  { %v1248_v63 = vsel %vm1175_vm8, %v1247_v10, %v1243_v9  ;;  %v608_v10 = vrot.slane %v3185_v30, %v3085_v52  ;;  %v604_v53 = vsel %vm522_vm7, %v603_v43, %v599_v8 }
 0x11c   :  { %v898_v14 = vpop.xlane.xlu1 %897  ;;  %v895_v13 = vpop.xlane.xlu0 %894  ;;  %v595_v5 = vsel %vm522_vm7, %v594_v62, %v590_v2 }
 0x11d   :  { %v1256_v41 = vrot.slane %v898_v14, %v3263_v37  ;;  %v1252_v24 = vrot.slane %v895_v13, %v3266_v6  ;;  %v613_v14 = vsel %vm522_vm7, %v612_v56, %v608_v10 }
 0x11f   :  { %v1257_v29 = vsel %vm1175_vm8, %v1256_v41, %v1252_v24  ;;  %v666_v41 = vsel %vm454_vm2, %v604_v53, %v595_v5 }
 0x120   :  { %v3310_v40 = vsel %vm454_vm2, %v1257_v29, %v1248_v63  ;;  %v95_v54 = vpop.xlane.xlu1 %94  ;;  %v92_v34 = vpop.xlane.xlu0 %91  ;;  %v667_v12 = vsel %vm456_vm3, %v613_v14, %v666_v41  ;;  %vm1396_vm2 = vcmask 1044480  }
 0x121   :  { %v160_v23 = vmul.f32 0.015625, %v95_v54  ;;  %v159_v1 = vmul.f32 0.015625, %v92_v34  ;;  %v668_v57 = vsel %vm458_vm4, %v3252_v50, %v667_v12 }
 0x123   :  { %v380_v47 = vrot.slane %v160_v23, %v2922_v17  ;;  %v376_v31 = vrot.slane %v159_v1, %v2919_v19 }
 0x124   :  { %v143_v45 = vpop.xlane.xlu1 %142  ;;  %v140_v35 = vpop.xlane.xlu0 %139 }
 0x125   :  { %v381_v38 = vsel %vm317_vm1, %v380_v47, %v376_v31  ;;  %v176_v3 = vmul.f32 0.015625, %v143_v45  ;;  %v175_v33 = vmul.f32 0.015625, %v140_v35 }
 0x126   :  { %v467_v0 = vsel %vm466_vm11, %v381_v38, %v465_v55 }
 0x127   :  { %v452_v9 = vrot.slane %v176_v3, %v2922_v17  ;;  %v448_v49 = vrot.slane %v175_v33, %v2919_v19  ;;  %478 = vst.msk [vmem:[#allocation2 + $0x3] sm:$0xff] %vm477_vm12, %v467_v0 }
 0x128   :  { %v206_v63 = vpop.xlane.xlu1 %205  ;;  %v203_v20 = vpop.xlane.xlu0 %202 }
 0x129   :  { %v453_v30 = vsel %vm317_vm1, %v452_v9, %v448_v49  ;;  %v558_v17 = vrot.slane %v206_v63, %v3081_v36  ;;  %v554_v19 = vrot.slane %v203_v20, %v3085_v52  ;;  %vm1375_vm1 = vcmask 1045504  }
 0x12a   :  { %v474_v28 = vsel %vm466_vm11, %v453_v30, %v473_v26 }
 0x12b   :  { %v559_v58 = vsel %vm522_vm7, %v558_v17, %v554_v19  ;;  %479 = vst.msk [vmem:[#allocation2 + $0xb] sm:$0xff] %vm477_vm12, %v474_v28 }
 0x12c   :  { %v3354_v13 = vsel %vm460_vm6, %v559_v58, %v3243_v42  ;;  %v254_v44 = vpop.xlane.xlu1 %253  ;;  %v251_v11 = vpop.xlane.xlu0 %250 }
 0x12d   :  { %v630_v24 = vrot.slane %v254_v44, %v3081_v36  ;;  %v626_v16 = vrot.slane %v251_v11, %v3085_v52 }
 0x12f   :  { %v631_v22 = vsel %vm522_vm7, %v630_v24, %v626_v16 }
 0x130   :  { %v3364_v29 = vsel %vm460_vm6, %v631_v22, %v668_v57  ;;  %v746_v42 = vpop.xlane.xlu1 %745  ;;  %v743_v59 = vpop.xlane.xlu0 %742 }
 0x131   :  { %v818_v20 = vmul.f32 0.015625, %v746_v42  ;;  %v817_v26 = vmul.f32 0.015625, %v743_v59 }
 0x133   :  { %v1022_v28 = vrot.slane %v818_v20, %v3003_v46  ;;  %v1018_v14 = vrot.slane %v817_v26, %v3008_v4 }
 0x134   :  { %v794_v25 = vpop.xlane.xlu1 %793  ;;  %v791_v54 = vpop.xlane.xlu0 %790 }
 0x135   :  { %v834_v58 = vmul.f32 0.015625, %v794_v25  ;;  %v833_v11 = vmul.f32 0.015625, %v791_v54  ;;  %v1023_v25 = vsel %vm977_vm5, %v1022_v28, %v1018_v14 }
 0x137   :  { %v1094_v54 = vrot.slane %v834_v58, %v3003_v46 }
 0x138   :  { %v856_v34 = vpop.xlane.xlu1 %855  ;;  %v853_v15 = vpop.xlane.xlu0 %852 }
 0x139   :  { %v1193_v23 = vrot.slane %v856_v34, %v3263_v37  ;;  %v1189_v1 = vrot.slane %v853_v15, %v3266_v6 }
 0x13b   :  { %v1194_v21 = vsel %vm1175_vm8, %v1193_v23, %v1189_v1 }
 0x13c   :  { %v3371_v50 = vsel %vm456_vm3, %v1194_v21, %v3287_v39  ;;  %v904_v32 = vpop.xlane.xlu1 %903  ;;  %v901_v18 = vpop.xlane.xlu0 %900 }
 0x13d   :  { %v1265_v47 = vrot.slane %v904_v32, %v3263_v37  ;;  %v1261_v31 = vrot.slane %v901_v18, %v3266_v6  ;;  %v1090_v18 = vrot.slane %v833_v11, %v3008_v4 }
 0x13f   :  { %v1266_v7 = vsel %vm1175_vm8, %v1265_v47, %v1261_v31 }
 0x140   :  { %v3378_v60 = vsel %vm456_vm3, %v1266_v7, %v3310_v40  ;;  %v212_v45 = vpop.xlane.xlu1 %211  ;;  %v209_v35 = vpop.xlane.xlu0 %208  ;;  %vm1417_vm3 = vcmask 1043456  }
 0x141   :  { %v567_v41 = vrot.slane %v212_v45, %v3081_v36  ;;  %v563_v24 = vrot.slane %v209_v35, %v3085_v52 }
 0x143   :  { %v568_v47 = vsel %vm522_vm7, %v567_v41, %v563_v24 }
 0x144   :  { %v3380_v55 = vpop.xlane.xlu1 %259  ;;  %v3382_v38 = vpop.xlane.xlu0 %256 }
 0x145   :  { %v639_v31 = vrot.slane %v3380_v55, %v3081_v36  ;;  %v635_v7 = vrot.slane %v3382_v38, %v3085_v52  ;;  %v663_v38 = vsel %vm462_vm9, %v568_v47, %v3354_v13 }
 0x148   :  { %v752_v39 = vpop.xlane.xlu1 %751  ;;  %v749_v3 = vpop.xlane.xlu0 %748 }
 0x149   :  { %v820_v30 = vmul.f32 0.015625, %v752_v39  ;;  %v819_v17 = vmul.f32 0.015625, %v749_v3 }
 0x14b   :  { %v1031_v16 = vrot.slane %v820_v30, %v3003_v46  ;;  %v1027_v12 = vrot.slane %v819_v17, %v3008_v4  ;;  %v1095_v30 = vsel %vm977_vm5, %v1094_v54, %v1090_v18 }
 0x14c   :  { %v800_v33 = vpop.xlane.xlu1 %799  ;;  %v797_v43 = vpop.xlane.xlu0 %796  ;;  %v1125_v41 = vsel %vm462_vm9, %v1095_v30, %v3280_v61 }
 0x14d   :  { %v836_v34 = vmul.f32 0.015625, %v800_v33  ;;  %v835_v15 = vmul.f32 0.015625, %v797_v43  ;;  %v1032_v45 = vsel %vm977_vm5, %v1031_v16, %v1027_v12 }
 0x150   :  { %v3384_v8 = vpop.xlane.xlu1 %861  ;;  %v3386_v51 = vpop.xlane.xlu0 %858 }
 0x154   :  { %v3388_v0 = vpop.xlane.xlu1 %909  ;;  %v3390_v56 = vpop.xlane.xlu0 %906 }
 0x158   :  { %v218_v40 = vpop.xlane.xlu1 %217  ;;  %v215_v10 = vpop.xlane.xlu0 %214 }
 0x159   :  { %v576_v57 = vrot.slane %v218_v40, %v3081_v36  ;;  %v572_v22 = vrot.slane %v215_v10, %v3085_v52  ;;  %v1103_v40 = vrot.slane %v836_v34, %v3003_v46  ;;  %v1099_v10 = vrot.slane %v835_v15, %v3008_v4 }
 0x15a   :  { %v1202_v34 = vrot.slane %v3384_v8, %v3263_v37  ;;  %v1198_v15 = vrot.slane %v3386_v51, %v3266_v6  ;;  %v1274_v51 = vrot.slane %v3388_v0, %v3263_v37 }
 0x15b   :  { %v577_v35 = vsel %vm522_vm7, %v576_v57, %v572_v22 }
 0x15c   :  { %v266_v9 = vpop.xlane.xlu1 %265  ;;  %v263_v49 = vpop.xlane.xlu0 %262  ;;  %v664_v20 = vsel %vm464_vm10, %v577_v35, %v663_v38  ;;  %v1203_v8 = vsel %vm1175_vm8, %v1202_v34, %v1198_v15 }
 0x15d   :  { %v648_v39 = vrot.slane %v266_v9, %v3081_v36  ;;  %v644_v3 = vrot.slane %v263_v49, %v3085_v52  ;;  %v1118_v49 = vsel %vm462_vm9, %v1023_v25, %v3271_v27  ;;  %v1314_v0 = vsel %vm458_vm4, %v1203_v8, %v3371_v50 }
 0x15e   :  { %v1119_v17 = vsel %vm464_vm10, %v1032_v45, %v1118_v49 }
 0x15f   :  { %v649_v13 = vsel %vm522_vm7, %v648_v39, %v644_v3 }
 0x160   :  { %v758_v62 = vpop.xlane.xlu1 %757  ;;  %v755_v2 = vpop.xlane.xlu0 %754 }
 0x161   :  { %v822_v5 = vmul.f32 0.015625, %v758_v62  ;;  %v821_v44 = vmul.f32 0.015625, %v755_v2 }
 0x163   :  { %v1040_v23 = vrot.slane %v822_v5, %v3003_v46  ;;  %v1036_v1 = vrot.slane %v821_v44, %v3008_v4 }
 0x164   :  { %v806_v48 = vpop.xlane.xlu1 %805  ;;  %v803_v63 = vpop.xlane.xlu0 %802 }
 0x165   :  { %v838_v21 = vmul.f32 0.015625, %v806_v48  ;;  %v837_v32 = vmul.f32 0.015625, %v803_v63  ;;  %v1041_v2 = vsel %vm977_vm5, %v1040_v23, %v1036_v1  ;;  %v640_v63 = vsel %vm522_vm7, %v639_v31, %v635_v7 }
 0x166   :  { %v1120_v27 = vsel %vm466_vm11, %v1041_v2, %v1119_v17  ;;  %v670_v44 = vsel %vm462_vm9, %v640_v63, %v3364_v29 }
 0x167   :  { %v1112_v48 = vrot.slane %v838_v21, %v3003_v46  ;;  %v1108_v9 = vrot.slane %v837_v32, %v3008_v4  ;;  %v1104_v4 = vsel %vm977_vm5, %v1103_v40, %v1099_v10  ;;  %v671_v24 = vsel %vm464_vm10, %v649_v13, %v670_v44  ;;  %v2389_v44 = vld [vmem:[%s3975_s1 + $0x23] ss:$0 sm:$0xff] }
 0x168   :  { %v3392_v19 = vpop.xlane.xlu1 %867  ;;  %v3394_v53 = vpop.xlane.xlu0 %864  ;;  %v1126_v12 = vsel %vm464_vm10, %v1104_v4, %v1125_v41 }
 0x169   :  { %v1113_v11 = vsel %vm977_vm5, %v1112_v48, %v1108_v9  ;;  %v1211_v23 = vrot.slane %v3392_v19, %v3263_v37  ;;  %v1207_v1 = vrot.slane %v3394_v53, %v3266_v6  ;;  %v1270_v19 = vrot.slane %v3390_v56, %v3266_v6 }
 0x16a   :  { %v1127_v22 = vsel %vm466_vm11, %v1113_v11, %v1126_v12  ;;  %v2390_v11 = vld [vmem:[%s3975_s1 + $0x2a] ss:$0 sm:$0xff]  ;;  %vm1459_vm5 = vcmask 1041408  }
 0x16b   :  { %v1212_v53 = vsel %vm1175_vm8, %v1211_v23, %v1207_v1 }
 0x16c   :  { %v3404_v42 = vpop.xlane.xlu1 %915  ;;  %v3406_v59 = vpop.xlane.xlu0 %912 }
 0x16d   :  { %v1283_v45 = vrot.slane %v3404_v42, %v3263_v37  ;;  %v1279_v35 = vrot.slane %v3406_v59, %v3266_v6  ;;  %v1315_v59 = vsel %vm460_vm6, %v1212_v53, %v1314_v0 }
 0x16f   :  { %v1284_v2 = vsel %vm1175_vm8, %v1283_v45, %v1279_v35 }
 0x170   :  { %v224_v33 = vpop.xlane.xlu1 %223  ;;  %v221_v43 = vpop.xlane.xlu0 %220 }
 0x171   :  { %v585_v62 = vrot.slane %v224_v33, %v3081_v36  ;;  %v581_v55 = vrot.slane %v221_v43, %v3085_v52 }
 0x173   :  { %v586_v26 = vsel %vm522_vm7, %v585_v62, %v581_v55  ;;  %v1275_v62 = vsel %vm1175_vm8, %v1274_v51, %v1270_v19 }
 0x174   :  { %v665_v28 = vsel %vm466_vm11, %v586_v26, %v664_v20  ;;  %v272_v46 = vpop.xlane.xlu1 %271  ;;  %v269_v14 = vpop.xlane.xlu0 %268  ;;  %v1321_v63 = vsel %vm458_vm4, %v1275_v62, %v3378_v60  ;;  %vm1438_vm4 = vcmask 1042432  }
 0x175   :  { %676 = vst.msk [vmem:[#allocation2 + $0x3] sm:$0xff] %vm675_vm13, %v665_v28  ;;  %v657_v58 = vrot.slane %v272_v46, %v3081_v36  ;;  %v653_v5 = vrot.slane %v269_v14, %v3085_v52  ;;  %v1322_v13 = vsel %vm460_vm6, %v1284_v2, %v1321_v63  ;;  %vm2322_vm6 = vcmask 130048  }
 0x176   :  { %1131 = vst.msk [vmem:[#allocation2 + $0x3] sm:$0xff] %vm1130_vm14, %v1120_v27 }
 0x177   :  { %v658_v16 = vsel %vm522_vm7, %v657_v58, %v653_v5  ;;  %v2385_v58 = vld [vmem:[%s3975_s1 + $0x7] ss:$0 sm:$0xff]  ;;  %v2388_v5 = vld [vmem:[%s3975_s1 + $0x1c] ss:$0 sm:$0xff] }
 0x178   :  { %v672_v36 = vsel %vm466_vm11, %v658_v16, %v671_v24  ;;  %v874_v57 = vpop.xlane.xlu1 %873  ;;  %v871_v52 = vpop.xlane.xlu0 %870  ;;  %v2384_v24 = vld [vmem:[%s3975_s1] ss:$0 sm:$0xff] }
 0x179   :  { %677 = vst.msk [vmem:[#allocation2 + $0xb] sm:$0xff] %vm675_vm13, %v672_v36  ;;  %v1220_v21 = vrot.slane %v874_v57, %v3263_v37  ;;  %v1216_v32 = vrot.slane %v871_v52, %v3266_v6 }
 0x17a   :  { %1132 = vst.msk [vmem:[#allocation2 + $0xb] sm:$0xff] %vm1130_vm14, %v1127_v22 }
 0x17b   :  { %v1221_v39 = vsel %vm1175_vm8, %v1220_v21, %v1216_v32 }
 0x17c   :  { %v922_v29 = vpop.xlane.xlu1 %921  ;;  %v919_v25 = vpop.xlane.xlu0 %918  ;;  %v1316_v50 = vsel %vm462_vm9, %v1221_v39, %v1315_v59 }
 0x17d   :  { %v1292_v3 = vrot.slane %v922_v29, %v3263_v37  ;;  %v1288_v33 = vrot.slane %v919_v25, %v3266_v6 }
 0x17f   :  { %v1293_v48 = vsel %vm1175_vm8, %v1292_v3, %v1288_v33 }
 0x180   :  { %v880_v54 = vpop.xlane.xlu1 %879  ;;  %v877_v61 = vpop.xlane.xlu0 %876  ;;  %v1323_v14 = vsel %vm462_vm9, %v1293_v48, %v1322_v13 }
 0x181   :  { %v1229_v18 = vrot.slane %v880_v54, %v3263_v37  ;;  %v1225_v47 = vrot.slane %v877_v61, %v3266_v6 }
 0x183   :  { %v1230_v43 = vsel %vm1175_vm8, %v1229_v18, %v1225_v47 }
 0x184   :  { %v928_v31 = vpop.xlane.xlu1 %927  ;;  %v925_v7 = vpop.xlane.xlu0 %924  ;;  %v1317_v9 = vsel %vm464_vm10, %v1230_v43, %v1316_v50 }
 0x185   :  { %v1301_v56 = vrot.slane %v928_v31, %v3263_v37  ;;  %v1297_v40 = vrot.slane %v925_v7, %v3266_v6 }
 0x187   :  { %v1302_v20 = vsel %vm1175_vm8, %v1301_v56, %v1297_v40 }
 0x188   :  { %v886_v10 = vpop.xlane.xlu1 %885  ;;  %v883_v42 = vpop.xlane.xlu0 %882  ;;  %v1324_v4 = vsel %vm464_vm10, %v1302_v20, %v1323_v14 }
 0x189   :  { %v1238_v55 = vrot.slane %v886_v10, %v3263_v37  ;;  %v1234_v38 = vrot.slane %v883_v42, %v3266_v6 }
 0x18b   :  { %v1239_v49 = vsel %vm1175_vm8, %v1238_v55, %v1234_v38 }
 0x18c   :  { %v1318_v26 = vsel %vm466_vm11, %v1239_v49, %v1317_v9  ;;  %v934_v30 = vpop.xlane.xlu1 %933  ;;  %v931_v17 = vpop.xlane.xlu0 %930 }
 0x18d   :  { %1329 = vst.msk [vmem:[#allocation2 + $0x3] sm:$0xff] %vm1328_vm15, %v1318_v26  ;;  %v1310_v28 = vrot.slane %v934_v30, %v3263_v37  ;;  %v1306_v46 = vrot.slane %v931_v17, %v3266_v6  ;;  %v2386_v37 = vld [vmem:[%s3975_s1 + $0xe] ss:$0 sm:$0xff]  ;;  %v2387_v6 = vld [vmem:[%s3975_s1 + $0x15] ss:$0 sm:$0xff] }
 0x18f   :  { %v1311_v60 = vsel %vm1175_vm8, %v1310_v28, %v1306_v46 }
 0x190   :  { %v1325_v27 = vsel %vm466_vm11, %v1311_v60, %v1324_v4 }
 0x191   :  { %1330 = vst.msk [vmem:[#allocation2 + $0xb] sm:$0xff] %vm1328_vm15, %v1325_v27 }
 0x194   :  { %v3528_v41 = vld [vmem:[#allocation2] sm:$0xff] }
 0x195   :  { %1472 = vrot.lane.b32.xlu0 %v3528_v41, %s2478_s8  ;;  %v1348_v16 = vmul.f32 %v2385_v58, %v3528_v41  ;;  %v1369_v12 = vmul.f32 %v2386_v37, %v3528_v41  ;;  %v1390_v36 = vmul.f32 %v2387_v6, %v3528_v41  ;;  %v1411_v57 = vmul.f32 %v2388_v5, %v3528_v41 }
 0x196   :  { %v1432_v52 = vmul.f32 %v2389_v44, %v3528_v41  ;;  %v1453_v22 = vmul.f32 %v2390_v11, %v3528_v41  ;;  %v1339_v34 = vmul.f32 %v2384_v24, %v3528_v41 }
 0x197   :  { %v1355_v29 = vrot.slane %v1348_v16, 1  ;;  %v1376_v25 = vrot.slane %v1369_v12, 2  ;;  %v1397_v15 = vrot.slane %v1390_v36, 3  ;;  %v1418_v23 = vrot.slane %v1411_v57, 4  ;;  %v2391_v12 = vld [vmem:[%s3975_s1 + $0x1] ss:$0 sm:$0xff] }
 0x198   :  { %v3541_v54 = vld [vmem:[#allocation2 + $0x8] sm:$0xff]  ;;  %v3543_v61 = vld [vmem:[#allocation2 + $0x10] sm:$0x3f]  ;;  %v1439_v1 = vrot.slane %v1432_v52, 5  ;;  %v1460_v47 = vrot.slane %v1453_v22, 6 }
 0x199   :  { %1474 = vrot.lane.b32.xlu1 %v3541_v54, %s2478_s8  ;;  %1612 = vrot.lane.b32.xlu0 %v3541_v54, %s2479_s11  ;;  %v1349_v21 = vmul.f32 %v2385_v58, %v3541_v54  ;;  %v1370_v32 = vmul.f32 %v2386_v37, %v3541_v54  ;;  %v1391_v18 = vmul.f32 %v2387_v6, %v3541_v54  ;;  %v2392_v57 = vld [vmem:[%s3975_s1 + $0x8] ss:$0 sm:$0xff]  ;;  %v2393_v52 = vld [vmem:[%s3975_s1 + $0xf] ss:$0 sm:$0xff] }
 0x19a   :  { %v1412_v31 = vmul.f32 %v2388_v5, %v3541_v54  ;;  %v1433_v7 = vmul.f32 %v2389_v44, %v3541_v54  ;;  %v1454_v8 = vmul.f32 %v2390_v11, %v3541_v54  ;;  %v1350_v51 = vmul.f32 %v2385_v58, %v3543_v61  ;;  %v2394_v22 = vld [vmem:[%s3975_s1 + $0x16] ss:$0 sm:$0xff] }
 0x19b   :  { %v1356_v19 = vrot.slane %v1349_v21, 1  ;;  %v1377_v53 = vrot.slane %v1370_v32, 2  ;;  %v1398_v45 = vrot.slane %v1391_v18, 3  ;;  %v1371_v35 = vmul.f32 %v2386_v37, %v3543_v61 }
 0x19c   :  { %v1419_v39 = vrot.slane %v1412_v31, 4  ;;  %v1440_v3 = vrot.slane %v1433_v7, 5  ;;  %v1461_v33 = vrot.slane %v1454_v8, 6  ;;  %v1358_v0 = vrot.slane %v1350_v51, 1 }
 0x19d   :  { %1476 = vrot.lane.b32.xlu1 %v3543_v61, %s2478_s8  ;;  %1748 = vrot.lane.b32.xlu0 %v3528_v41, %s2480_s12  ;;  %v1357_v43 = vsel %vm1354_vm0, %v1355_v29, %v1356_v19  ;;  %v1378_v56 = vsel %vm1375_vm1, %v1376_v25, %v1377_v53  ;;  %v1399_v40 = vsel %vm1396_vm2, %v1397_v15, %v1398_v45  ;;  %v1379_v10 = vrot.slane %v1371_v35, 2  ;;  %v2395_v29 = vld [vmem:[%s3975_s1 + $0x1d] ss:$0 sm:$0xff]  ;;  %v2396_v25 = vld [vmem:[%s3975_s1 + $0x24] ss:$0 sm:$0xff] }
 0x19e   :  { %v1362_v42 = vadd.f32 %v1357_v43, %v1339_v34  ;;  %v1420_v62 = vsel %vm1417_vm3, %v1418_v23, %v1419_v39  ;;  %v1441_v59 = vsel %vm1438_vm4, %v1439_v1, %v1440_v3  ;;  %v1462_v55 = vsel %vm1459_vm5, %v1460_v47, %v1461_v33 }
 0x19f   :  { %v1392_v38 = vmul.f32 %v2387_v6, %v3543_v61  ;;  %v1413_v2 = vmul.f32 %v2388_v5, %v3543_v61  ;;  %v1434_v50 = vmul.f32 %v2389_v44, %v3543_v61  ;;  %v1455_v48 = vmul.f32 %v2390_v11, %v3543_v61 }
 0x1a0   :  { %v1383_v9 = vadd.f32 %v1378_v56, %v1362_v42  ;;  %v1340_v49 = vmul.f32 %v2384_v24, %v3541_v54  ;;  %v1359_v63 = vsel %vm1354_vm0, %v1356_v19, %v1358_v0  ;;  %v1380_v20 = vsel %vm1375_vm1, %v1377_v53, %v1379_v10 }
 0x1a1   :  { %1610 = vrot.lane.b32.xlu1 %v3528_v41, %s2479_s11  ;;  %1752 = vrot.lane.b32.xlu0 %v3543_v61, %s2480_s12  ;;  %v1400_v26 = vrot.slane %v1392_v38, 3  ;;  %v1421_v30 = vrot.slane %v1413_v2, 4  ;;  %v1442_v17 = vrot.slane %v1434_v50, 5  ;;  %v1463_v13 = vrot.slane %v1455_v48, 6 }
 0x1a2   :  { %v1404_v28 = vadd.f32 %v1399_v40, %v1383_v9  ;;  %v1363_v46 = vadd.f32 %v1359_v63, %v1340_v49 }
 0x1a3   :  { %v1401_v14 = vsel %vm1396_vm2, %v1398_v45, %v1400_v26  ;;  %v1422_v4 = vsel %vm1417_vm3, %v1419_v39, %v1421_v30  ;;  %v1443_v60 = vsel %vm1438_vm4, %v1440_v3, %v1442_v17  ;;  %v1464_v27 = vsel %vm1459_vm5, %v1461_v33, %v1463_v13 }
 0x1a4   :  { %v1425_v58 = vadd.f32 %v1420_v62, %v1404_v28  ;;  %v1384_v37 = vadd.f32 %v1380_v20, %v1363_v46 }
 0x1a5   :  { %1614 = vrot.lane.b32.xlu1 %v3543_v61, %s2479_s11  ;;  %1888 = vrot.lane.b32.xlu0 %v3541_v54, %s2481_s13 }
 0x1a6   :  { %v1446_v6 = vadd.f32 %v1441_v59, %v1425_v58  ;;  %v1405_v5 = vadd.f32 %v1401_v14, %v1384_v37  ;;  %v2397_v59 = vld [vmem:[%s3975_s1 + $0x2b] ss:$0 sm:$0xff] }
 0x1a8   :  { %v1467_v44 = vadd.f32 %v1462_v55, %v1446_v6  ;;  %v1426_v11 = vadd.f32 %v1422_v4, %v1405_v5 }
 0x1a9   :  { %1750 = vrot.lane.b32.xlu1 %v3541_v54, %s2480_s12  ;;  %2024 = vrot.lane.b32.xlu0 %v3528_v41, %s2482_s14 }
 0x1aa   :  { %v1447_v24 = vadd.f32 %v1443_v60, %v1426_v11  ;;  %v2398_v11 = vld [vmem:[%s3975_s1 + $0x2] ss:$0 sm:$0xff] }
 0x1ac   :  { %v1468_v16 = vadd.f32 %v1464_v27, %v1447_v24 }
 0x1ad   :  { %1886 = vrot.lane.b32.xlu1 %v3528_v41, %s2481_s13  ;;  %2028 = vrot.lane.b32.xlu0 %v3543_v61, %s2482_s14 }
 0x1b1   :  { %1890 = vrot.lane.b32.xlu1 %v3543_v61, %s2481_s13  ;;  %2164 = vrot.lane.b32.xlu0 %v3541_v54, %s2483_s15  ;;  %s2485_s13 = smov 64  }
 0x1b5   :  { %2026 = vrot.lane.b32.xlu1 %v3541_v54, %s2482_s14  ;;  %s2486_s14 = smov [#allocation3]  }
 0x1b9   :  { %2162 = vrot.lane.b32.xlu1 %v3528_v41, %s2483_s15 }
 0x1bd   :  { %2166 = vrot.lane.b32.xlu1 %v3543_v61, %s2483_s15  ;;  %s2341_s15 = sshll.u32 %s2486_s14, 4  ;;  %s2342_s15 = int_to_ptr.vmem [resolvable:$true] %s2341_s15 }
 0x1be   :  { %s2453_s16 = scalar_lea.vmem %s2342_s15, 512  ;;  %p2458_p1 = scmp.lt.s32.totalorder %s2342_s15, %s2342_s15 }
 0x1bf   :  { %p2454_p0 = scmp.ne.s32.totalorder %s2342_s15, %s2453_s16  ;;  %p2459_p2 = scmp.lt.s32.totalorder %s2453_s16, %s2453_s16 }
 0x1c1   :  { %p2460_p3 = por %p2459_p2, %p2458_p1 }
 0x1c3   :  { %p2461_p4 = pnand %p2460_p3, %p2454_p0 }
 0x207   :  { %v1473_v36 = vpop.permute.xlu0 %1472 }
 0x208   :  { %v1486_v41 = vmul.f32 %v2391_v12, %v1473_v36  ;;  %v1495_v54 = vmul.f32 %v2392_v57, %v1473_v36  ;;  %v1515_v34 = vmul.f32 %v2393_v52, %v1473_v36  ;;  %v1535_v15 = vmul.f32 %v2394_v22, %v1473_v36 }
 0x209   :  { %v1555_v18 = vmul.f32 %v2395_v29, %v1473_v36  ;;  %v1575_v47 = vmul.f32 %v2396_v25, %v1473_v36  ;;  %v1595_v14 = vmul.f32 %v2397_v59, %v1473_v36 }
 0x20a   :  { %v1488_v31 = vadd.f32 %v1486_v41, %v1467_v44  ;;  %v1501_v51 = vrot.slane %v1495_v54, 1  ;;  %v1521_v35 = vrot.slane %v1515_v34, 2  ;;  %v1541_v39 = vrot.slane %v1535_v15, 3  ;;  %v3630_v44 = vld [vmem:[%s3975_s1 + $0xa] ss:$0 sm:$0xff] }
 0x20b   :  { %v1475_v61 = vpop.permute.xlu1 %1474  ;;  %v3615_v56 = vpop.permute.xlu0 %1612  ;;  %v1561_v62 = vrot.slane %v1555_v18, 4  ;;  %v1581_v46 = vrot.slane %v1575_v47, 5  ;;  %v3640_v41 = vld [vmem:[%s3975_s1 + $0x11] ss:$0 sm:$0xff]  ;;  %v1601_v54 = vrot.slane %v1595_v14, 6 }
 0x20c   :  { %v1496_v23 = vmul.f32 %v2392_v57, %v1475_v61  ;;  %v1516_v1 = vmul.f32 %v2393_v52, %v1475_v61  ;;  %v1536_v21 = vmul.f32 %v2394_v22, %v1475_v61  ;;  %v1556_v32 = vmul.f32 %v2395_v29, %v1475_v61  ;;  %v3651_v34 = vld [vmem:[%s3975_s1 + $0x3] ss:$0 sm:$0xff] }
 0x20d   :  { %v1487_v19 = vmul.f32 %v2391_v12, %v1475_v61  ;;  %v1576_v53 = vmul.f32 %v2396_v25, %v1475_v61  ;;  %v1596_v49 = vmul.f32 %v2397_v59, %v1475_v61 }
 0x20e   :  { %v1502_v7 = vrot.slane %v1496_v23, 1  ;;  %v1522_v8 = vrot.slane %v1516_v1, 2  ;;  %v1542_v3 = vrot.slane %v1536_v21, 3  ;;  %v1562_v40 = vrot.slane %v1556_v32, 4  ;;  %v2399_v23 = vld [vmem:[%s3975_s1 + $0x9] ss:$0 sm:$0xff] }
 0x20f   :  { %v1477_v45 = vpop.permute.xlu1 %1476  ;;  %v1489_v48 = vadd.f32 %v1487_v19, %v1468_v16  ;;  %v1582_v9 = vrot.slane %v1576_v53, 5  ;;  %v3625_v5 = vpop.permute.xlu0 %1748  ;;  %v1602_v24 = vrot.slane %v1596_v49, 6  ;;  %v1625_v1 = vmul.f32 %v2398_v11, %v3615_v56  ;;  %v3664_v32 = vld [vmem:[%s3975_s1 + $0x1f] ss:$0 sm:$0xff] }
 0x210   :  { %v1497_v33 = vmul.f32 %v2392_v57, %v1477_v45  ;;  %v1503_v0 = vsel %vm1354_vm0, %v1501_v51, %v1502_v7  ;;  %v1517_v43 = vmul.f32 %v2393_v52, %v1477_v45  ;;  %v1537_v42 = vmul.f32 %v2394_v22, %v1477_v45 }
 0x211   :  { %v1508_v10 = vadd.f32 %v1503_v0, %v1488_v31  ;;  %v1523_v38 = vsel %vm1375_vm1, %v1521_v35, %v1522_v8  ;;  %v1557_v50 = vmul.f32 %v2395_v29, %v1477_v45  ;;  %v1543_v26 = vsel %vm1396_vm2, %v1541_v39, %v1542_v3  ;;  %v3645_v29 = vld [vmem:[%s3975_s1 + $0x18] ss:$0 sm:$0xff]  ;;  %v2400_v0 = vld [vmem:[%s3975_s1 + $0x10] ss:$0 sm:$0xff] }
 0x212   :  { %v1504_v55 = vrot.slane %v1497_v33, 1  ;;  %v1524_v2 = vrot.slane %v1517_v43, 2  ;;  %v1544_v30 = vrot.slane %v1537_v42, 3  ;;  %v1577_v17 = vmul.f32 %v2396_v25, %v1477_v45 }
 0x213   :  { %v1528_v63 = vadd.f32 %v1523_v38, %v1508_v10  ;;  %v1563_v60 = vsel %vm1417_vm3, %v1561_v62, %v1562_v40  ;;  %v1564_v27 = vrot.slane %v1557_v50, 4  ;;  %v1597_v58 = vmul.f32 %v2397_v59, %v1477_v45  ;;  %v1611_v52 = vpop.permute.xlu1 %1610  ;;  %v2401_v62 = vld [vmem:[%s3975_s1 + $0x17] ss:$0 sm:$0xff]  ;;  %v2402_v59 = vld [vmem:[%s3975_s1 + $0x1e] ss:$0 sm:$0xff] }
 0x214   :  { %v1505_v20 = vsel %vm1354_vm0, %v1502_v7, %v1504_v55  ;;  %v1525_v4 = vsel %vm1375_vm1, %v1522_v8, %v1524_v2  ;;  %v1545_v16 = vsel %vm1396_vm2, %v1542_v3, %v1544_v30  ;;  %v1583_v12 = vsel %vm1438_vm4, %v1581_v46, %v1582_v9  ;;  %v3679_v8 = vld [vmem:[%s3975_s1 + $0x26] ss:$0 sm:$0xff]  ;;  %v2404_v30 = vld [vmem:[%s3975_s1 + $0x2c] ss:$0 sm:$0xff] }
 0x215   :  { %v1509_v13 = vadd.f32 %v1505_v20, %v1489_v48  ;;  %v1548_v28 = vadd.f32 %v1543_v26, %v1528_v63  ;;  %v1584_v36 = vrot.slane %v1577_v17, 5  ;;  %v1565_v25 = vsel %vm1417_vm3, %v1562_v40, %v1564_v27 }
 0x216   :  { %v1604_v61 = vrot.slane %v1597_v58, 6  ;;  %v3655_v15 = vmul.f32 %v3630_v44, %v3625_v5  ;;  %v1603_v47 = vsel %vm1459_vm5, %v1601_v54, %v1602_v24  ;;  %v3670_v31 = vmul.f32 %v3640_v41, %v3625_v5 }
 0x217   :  { %v1529_v37 = vadd.f32 %v1525_v4, %v1509_v13  ;;  %v1568_v6 = vadd.f32 %v1563_v60, %v1548_v28  ;;  %v1585_v18 = vsel %vm1438_vm4, %v1582_v9, %v1584_v36  ;;  %v3674_v7 = vmul.f32 %v3645_v29, %v3625_v5  ;;  %v1615_v55 = vpop.permute.xlu1 %1614  ;;  %v2403_v9 = vld [vmem:[%s3975_s1 + $0x25] ss:$0 sm:$0xff] }
 0x218   :  { %v3683_v19 = vmul.f32 %v3651_v34, %v3625_v5  ;;  %v1634_v45 = vmul.f32 %v2399_v23, %v3615_v56  ;;  %v1605_v35 = vsel %vm1459_vm5, %v1602_v24, %v1604_v61  ;;  %v1624_v39 = vmul.f32 %v2398_v11, %v1611_v52 }
 0x219   :  { %v1549_v57 = vadd.f32 %v1545_v16, %v1529_v37  ;;  %v1588_v22 = vadd.f32 %v1583_v12, %v1568_v6  ;;  %v1777_v3 = vrot.slane %v3655_v15, 1  ;;  %v3690_v33 = vmul.f32 %v3664_v32, %v3625_v5 }
 0x21a   :  { %v3697_v40 = vmul.f32 %v3679_v8, %v3625_v5  ;;  %v1633_v10 = vmul.f32 %v2399_v23, %v1611_v52  ;;  %v1653_v42 = vmul.f32 %v2400_v0, %v1611_v52  ;;  %v1797_v38 = vrot.slane %v3670_v31, 2  ;;  %v3766_v31 = vld [vmem:[%s3975_s1 + $0xc] ss:$0 sm:$0xff] }
 0x21b   :  { %v1569_v21 = vadd.f32 %v1565_v25, %v1549_v57  ;;  %v1608_v53 = vadd.f32 %v1603_v47, %v1588_v22  ;;  %v1817_v2 = vrot.slane %v3674_v7, 3  ;;  %v1673_v50 = vmul.f32 %v2401_v62, %v1611_v52  ;;  %v3778_v7 = vld [vmem:[%s3975_s1 + $0x1a] ss:$0 sm:$0xff] }
 0x21c   :  { %v1693_v48 = vmul.f32 %v2402_v59, %v1611_v52  ;;  %v1639_v63 = vrot.slane %v1633_v10, 1  ;;  %v1659_v20 = vrot.slane %v1653_v42, 2  ;;  %v1713_v26 = vmul.f32 %v2403_v9, %v1611_v52 }
 0x21d   :  { %v1589_v51 = vadd.f32 %v1585_v18, %v1569_v21  ;;  %v1626_v49 = vadd.f32 %v1624_v39, %v1608_v53  ;;  %v1679_v17 = vrot.slane %v1673_v50, 3  ;;  %v1733_v13 = vmul.f32 %v2404_v30, %v1611_v52  ;;  %v2411_v53 = vld [vmem:[%s3975_s1 + $0x2d] ss:$0 sm:$0xff]  ;;  %v1753_v50 = vpop.permute.xlu0 %1752 }
 0x21e   :  { %v1635_v46 = vmul.f32 %v2399_v23, %v1615_v55  ;;  %v1699_v14 = vrot.slane %v1693_v48, 4  ;;  %v1640_v4 = vrot.slane %v1634_v45, 1  ;;  %v1654_v60 = vmul.f32 %v2400_v0, %v3615_v56 }
 0x21f   :  { %v1609_v43 = vadd.f32 %v1605_v35, %v1589_v51  ;;  %v1655_v27 = vmul.f32 %v2400_v0, %v1615_v55  ;;  %v1674_v37 = vmul.f32 %v2401_v62, %v3615_v56  ;;  %v1675_v6 = vmul.f32 %v2401_v62, %v1615_v55 }
 0x220   :  { %v1642_v58 = vrot.slane %v1635_v46, 1  ;;  %v1694_v11 = vmul.f32 %v2402_v59, %v3615_v56  ;;  %v1641_v24 = vsel %vm1354_vm0, %v1639_v63, %v1640_v4  ;;  %v1660_v16 = vrot.slane %v1654_v60, 2 }
 0x221   :  { %v1627_v28 = vadd.f32 %v1625_v1, %v1609_v43  ;;  %v1662_v12 = vrot.slane %v1655_v27, 2  ;;  %v1695_v36 = vmul.f32 %v2402_v59, %v1615_v55  ;;  %v1719_v57 = vrot.slane %v1713_v26, 5  ;;  %v1751_v59 = vpop.permute.xlu1 %1750 }
 0x222   :  { %v1643_v52 = vsel %vm1354_vm0, %v1640_v4, %v1642_v58  ;;  %v1646_v22 = vadd.f32 %v1641_v24, %v1626_v49  ;;  %v1682_v25 = vrot.slane %v1675_v6, 3  ;;  %v1739_v54 = vrot.slane %v1733_v13, 6 }
 0x223   :  { %v1647_v61 = vadd.f32 %v1643_v52, %v1627_v28  ;;  %v1661_v23 = vsel %vm1375_vm1, %v1659_v20, %v1660_v16  ;;  %v1680_v1 = vrot.slane %v1674_v37, 3  ;;  %v1663_v21 = vsel %vm1375_vm1, %v1660_v16, %v1662_v12 }
 0x224   :  { %v1666_v18 = vadd.f32 %v1661_v23, %v1646_v22  ;;  %v1700_v47 = vrot.slane %v1694_v11, 4  ;;  %v1702_v51 = vrot.slane %v1695_v36, 4  ;;  %v1714_v39 = vmul.f32 %v2403_v9, %v3615_v56 }
 0x225   :  { %v1667_v45 = vadd.f32 %v1663_v21, %v1647_v61  ;;  %v1681_v35 = vsel %vm1396_vm2, %v1679_v17, %v1680_v1  ;;  %v1715_v0 = vmul.f32 %v2403_v9, %v1615_v55  ;;  %v1683_v43 = vsel %vm1396_vm2, %v1680_v1, %v1682_v25  ;;  %v3745_v25 = vpop.permute.xlu0 %1888 }
 0x226   :  { %v1686_v10 = vadd.f32 %v1681_v35, %v1666_v18  ;;  %v1734_v42 = vmul.f32 %v2404_v30, %v3615_v56  ;;  %v1735_v62 = vmul.f32 %v2404_v30, %v1615_v55  ;;  %v1701_v49 = vsel %vm1417_vm3, %v1699_v14, %v1700_v47 }
 0x227   :  { %v1687_v48 = vadd.f32 %v1683_v43, %v1667_v45  ;;  %v1720_v63 = vrot.slane %v1714_v39, 5  ;;  %v1722_v20 = vrot.slane %v1715_v0, 5  ;;  %v3729_v26 = vmul.f32 %v2411_v53, %v3625_v5 }
 0x228   :  { %v1703_v17 = vsel %vm1417_vm3, %v1700_v47, %v1702_v51  ;;  %v1706_v13 = vadd.f32 %v1701_v49, %v1686_v10  ;;  %v1742_v9 = vrot.slane %v1735_v62, 6  ;;  %v1740_v4 = vrot.slane %v1734_v42, 6  ;;  %v3784_v49 = vld [vmem:[%s3975_s1 + $0x21] ss:$0 sm:$0xff] }
 0x229   :  { %v1707_v28 = vadd.f32 %v1703_v17, %v1687_v48  ;;  %v1721_v46 = vsel %vm1438_vm4, %v1719_v57, %v1720_v63  ;;  %v1772_v56 = vmul.f32 %v3630_v44, %v1751_v59  ;;  %v1773_v55 = vmul.f32 %v3630_v44, %v1753_v50 }
 0x22a   :  { %v1723_v30 = vsel %vm1438_vm4, %v1720_v63, %v1722_v20  ;;  %v1726_v14 = vadd.f32 %v1721_v46, %v1706_v13  ;;  %v1792_v60 = vmul.f32 %v3640_v41, %v1751_v59  ;;  %v1741_v5 = vsel %vm1459_vm5, %v1739_v54, %v1740_v4  ;;  %v3789_v63 = vld [vmem:[%s3975_s1 + $0x28] ss:$0 sm:$0xff]  ;;  %v1887_v46 = vpop.permute.xlu1 %1886 }
 0x22b   :  { %v1727_v27 = vadd.f32 %v1723_v30, %v1707_v28  ;;  %v1778_v58 = vrot.slane %v1772_v56, 1  ;;  %v1812_v37 = vmul.f32 %v3645_v29, %v1751_v59  ;;  %v1793_v6 = vmul.f32 %v3640_v41, %v1753_v50  ;;  %v3799_v28 = vld [vmem:[%s3975_s1 + $0x5] ss:$0 sm:$0xff] }
 0x22c   :  { %v1813_v11 = vmul.f32 %v3645_v29, %v1753_v50  ;;  %v1743_v24 = vsel %vm1459_vm5, %v1740_v4, %v1742_v9  ;;  %v1746_v16 = vadd.f32 %v1741_v5, %v1726_v14  ;;  %v1763_v44 = vmul.f32 %v3651_v34, %v1751_v59  ;;  %v3811_v14 = vld [vmem:[%s3975_s1 + $0x2f] ss:$0 sm:$0xff] }
 0x22d   :  { %v1747_v12 = vadd.f32 %v1743_v24, %v1727_v27  ;;  %v1798_v36 = vrot.slane %v1792_v60, 2  ;;  %v1832_v57 = vmul.f32 %v3664_v32, %v1751_v59  ;;  %v1780_v52 = vrot.slane %v1773_v55, 1 }
 0x22e   :  { %v1833_v22 = vmul.f32 %v3664_v32, %v1753_v50  ;;  %v1764_v54 = vadd.f32 %v3683_v19, %v1746_v16  ;;  %v1852_v41 = vmul.f32 %v3679_v8, %v1751_v59  ;;  %v1853_v29 = vmul.f32 %v3679_v8, %v1753_v50 }
 0x22f   :  { %v1765_v61 = vadd.f32 %v1763_v44, %v1747_v12  ;;  %v1779_v23 = vsel %vm1354_vm0, %v1777_v3, %v1778_v58  ;;  %v1818_v34 = vrot.slane %v1812_v37, 3  ;;  %v1800_v1 = vrot.slane %v1793_v6, 2 }
 0x230   :  { %v1820_v21 = vrot.slane %v1813_v11, 3  ;;  %v1781_v18 = vsel %vm1354_vm0, %v1778_v58, %v1780_v52  ;;  %v1784_v47 = vadd.f32 %v1779_v23, %v1764_v54  ;;  %v1799_v19 = vsel %vm1375_vm1, %v1797_v38, %v1798_v36  ;;  %v2414_v52 = vld [vmem:[%s3975_s1 + $0x12] ss:$0 sm:$0xff]  ;;  %v2416_v23 = vld [vmem:[%s3975_s1 + $0x20] ss:$0 sm:$0xff] }
 0x231   :  { %v1785_v32 = vadd.f32 %v1781_v18, %v1765_v61  ;;  %v1838_v51 = vrot.slane %v1832_v57, 4  ;;  %v1872_v45 = vmul.f32 %v2411_v53, %v1751_v59  ;;  %v1873_v35 = vmul.f32 %v2411_v53, %v1753_v50  ;;  %v2025_v59 = vpop.permute.xlu0 %2024  ;;  %v2413_v57 = vld [vmem:[%s3975_s1 + $0xb] ss:$0 sm:$0xff]  ;;  %v2415_v61 = vld [vmem:[%s3975_s1 + $0x19] ss:$0 sm:$0xff] }
 0x232   :  { %v1801_v8 = vsel %vm1375_vm1, %v1798_v36, %v1800_v1  ;;  %v1804_v39 = vadd.f32 %v1799_v19, %v1784_v47  ;;  %v1858_v15 = vrot.slane %v1852_v41, 5  ;;  %v1837_v3 = vrot.slane %v3690_v33, 4  ;;  %v3773_v33 = vld [vmem:[%s3975_s1 + $0x13] ss:$0 sm:$0xff]  ;;  %v2417_v47 = vld [vmem:[%s3975_s1 + $0x27] ss:$0 sm:$0xff] }
 0x233   :  { %v1857_v0 = vrot.slane %v3697_v40, 5  ;;  %v1805_v43 = vadd.f32 %v1801_v8, %v1785_v32  ;;  %v1819_v10 = vsel %vm1396_vm2, %v1817_v2, %v1818_v34  ;;  %v1877_v38 = vrot.slane %v3729_v26, 6  ;;  %v2412_v26 = vld [vmem:[%s3975_s1 + $0x4] ss:$0 sm:$0xff]  ;;  %v1891_v32 = vpop.permute.xlu1 %1890 }
 0x234   :  { %v1840_v53 = vrot.slane %v1833_v22, 4  ;;  %v1821_v42 = vsel %vm1396_vm2, %v1818_v34, %v1820_v21  ;;  %v1824_v62 = vadd.f32 %v1819_v10, %v1804_v39  ;;  %v1860_v40 = vrot.slane %v1853_v29, 5 }
 0x235   :  { %v1825_v2 = vadd.f32 %v1821_v42, %v1805_v43  ;;  %v1839_v50 = vsel %vm1417_vm3, %v1837_v3, %v1838_v51  ;;  %v1878_v48 = vrot.slane %v1872_v45, 6  ;;  %v1880_v20 = vrot.slane %v1873_v35, 6 }
 0x236   :  { %v1841_v17 = vsel %vm1417_vm3, %v1838_v51, %v1840_v53  ;;  %v1844_v13 = vadd.f32 %v1839_v50, %v1824_v62  ;;  %v1859_v9 = vsel %vm1438_vm4, %v1857_v0, %v1858_v15  ;;  %v1861_v56 = vsel %vm1438_vm4, %v1858_v15, %v1860_v40  ;;  %v2418_v53 = vld [vmem:[%s3975_s1 + $0x2e] ss:$0 sm:$0xff] }
 0x237   :  { %v1845_v4 = vadd.f32 %v1841_v17, %v1825_v2  ;;  %v3803_v55 = vmul.f32 %v3766_v31, %v2025_v59  ;;  %v3806_v30 = vmul.f32 %v3773_v33, %v2025_v59  ;;  %v3814_v27 = vmul.f32 %v3778_v7, %v2025_v59 }
 0x238   :  { %v1864_v60 = vadd.f32 %v1859_v9, %v1844_v13  ;;  %v3817_v5 = vmul.f32 %v3784_v49, %v2025_v59  ;;  %v3820_v58 = vmul.f32 %v3789_v63, %v2025_v59  ;;  %v1901_v37 = vmul.f32 %v2412_v26, %v3745_v25 }
 0x239   :  { %v1865_v6 = vadd.f32 %v1861_v56, %v1845_v4  ;;  %v3824_v11 = vmul.f32 %v3799_v28, %v2025_v59  ;;  %v1879_v24 = vsel %vm1459_vm5, %v1877_v38, %v1878_v48  ;;  %v1881_v16 = vsel %vm1459_vm5, %v1878_v48, %v1880_v20 }
 0x23a   :  { %v1884_v12 = vadd.f32 %v1879_v24, %v1864_v60  ;;  %v1900_v44 = vmul.f32 %v2412_v26, %v1887_v46  ;;  %v3829_v36 = vmul.f32 %v3811_v14, %v2025_v59  ;;  %v2053_v54 = vrot.slane %v3803_v55, 1 }
 0x23b   :  { %v1885_v22 = vadd.f32 %v1881_v16, %v1865_v6  ;;  %v1909_v41 = vmul.f32 %v2413_v57, %v1887_v46  ;;  %v1929_v29 = vmul.f32 %v2414_v52, %v1887_v46  ;;  %v2073_v34 = vrot.slane %v3806_v30, 2 }
 0x23c   :  { %v2093_v1 = vrot.slane %v3814_v27, 3  ;;  %v2113_v21 = vrot.slane %v3817_v5, 4  ;;  %v2133_v18 = vrot.slane %v3820_v58, 5  ;;  %v1902_v19 = vadd.f32 %v1900_v44, %v1884_v12  ;;  %v2429_v5 = vld [vmem:[%s3975_s1 + $0x1b] ss:$0 sm:$0xff] }
 0x23d   :  { %v1949_v51 = vmul.f32 %v2415_v61, %v1887_v46  ;;  %v1969_v45 = vmul.f32 %v2416_v23, %v1887_v46  ;;  %v1989_v35 = vmul.f32 %v2417_v47, %v1887_v46  ;;  %v1915_v8 = vrot.slane %v1909_v41, 1 }
 0x23e   :  { %v1935_v39 = vrot.slane %v1929_v29, 2  ;;  %v1903_v15 = vadd.f32 %v1901_v37, %v1885_v22  ;;  %v1910_v3 = vmul.f32 %v2413_v57, %v3745_v25  ;;  %v1911_v0 = vmul.f32 %v2413_v57, %v1891_v32  ;;  %v2027_v22 = vpop.permute.xlu1 %2026 }
 0x23f   :  { %v1930_v43 = vmul.f32 %v2414_v52, %v3745_v25  ;;  %v1931_v10 = vmul.f32 %v2414_v52, %v1891_v32  ;;  %v1950_v38 = vmul.f32 %v2415_v61, %v3745_v25  ;;  %v1951_v62 = vmul.f32 %v2415_v61, %v1891_v32 }
 0x240   :  { %v1916_v42 = vrot.slane %v1910_v3, 1  ;;  %v1970_v59 = vmul.f32 %v2416_v23, %v3745_v25  ;;  %v1971_v40 = vmul.f32 %v2416_v23, %v1891_v32  ;;  %v1955_v2 = vrot.slane %v1949_v51, 3 }
 0x241   :  { %v2009_v50 = vmul.f32 %v2418_v53, %v1887_v46  ;;  %v1918_v48 = vrot.slane %v1911_v0, 1  ;;  %v1938_v20 = vrot.slane %v1931_v10, 2  ;;  %v1975_v26 = vrot.slane %v1969_v45, 4 }
 0x242   :  { %v1995_v17 = vrot.slane %v1989_v35, 5  ;;  %v1917_v13 = vsel %vm1354_vm0, %v1915_v8, %v1916_v42  ;;  %v1936_v9 = vrot.slane %v1930_v43, 2  ;;  %v1956_v60 = vrot.slane %v1950_v38, 3  ;;  %v2029_v8 = vpop.permute.xlu0 %2028 }
 0x243   :  { %v1919_v4 = vsel %vm1354_vm0, %v1916_v42, %v1918_v48  ;;  %v1922_v56 = vadd.f32 %v1917_v13, %v1902_v19  ;;  %v1958_v37 = vrot.slane %v1951_v62, 3  ;;  %v1976_v16 = vrot.slane %v1970_v59, 4 }
 0x244   :  { %v1923_v6 = vadd.f32 %v1919_v4, %v1903_v15  ;;  %v1937_v24 = vsel %vm1375_vm1, %v1935_v39, %v1936_v9  ;;  %v1978_v12 = vrot.slane %v1971_v40, 4  ;;  %v1939_v44 = vsel %vm1375_vm1, %v1936_v9, %v1938_v20 }
 0x245   :  { %v1942_v46 = vadd.f32 %v1937_v24, %v1922_v56  ;;  %v1990_v57 = vmul.f32 %v2417_v47, %v3745_v25  ;;  %v1991_v52 = vmul.f32 %v2417_v47, %v1891_v32  ;;  %v1957_v29 = vsel %vm1396_vm2, %v1955_v2, %v1956_v60 }
 0x246   :  { %v1943_v41 = vadd.f32 %v1939_v44, %v1923_v6  ;;  %v2010_v61 = vmul.f32 %v2418_v53, %v3745_v25  ;;  %v2011_v23 = vmul.f32 %v2418_v53, %v1891_v32  ;;  %v2015_v19 = vrot.slane %v2009_v50, 6 }
 0x247   :  { %v1959_v51 = vsel %vm1396_vm2, %v1956_v60, %v1958_v37  ;;  %v1962_v45 = vadd.f32 %v1957_v29, %v1942_v46  ;;  %v1998_v35 = vrot.slane %v1991_v52, 5  ;;  %v1977_v15 = vsel %vm1417_vm3, %v1975_v26, %v1976_v16 }
 0x248   :  { %v1963_v39 = vadd.f32 %v1959_v51, %v1943_v41  ;;  %v1996_v3 = vrot.slane %v1990_v57, 5  ;;  %v2048_v0 = vmul.f32 %v3766_v31, %v2027_v22  ;;  %v2153_v47 = vrot.slane %v3829_v36, 6  ;;  %v3889_v57 = vpop.permute.xlu1 %2162 }
 0x249   :  { %v1979_v43 = vsel %vm1417_vm3, %v1976_v16, %v1978_v12  ;;  %v1982_v10 = vadd.f32 %v1977_v15, %v1962_v45  ;;  %v2018_v38 = vrot.slane %v2011_v23, 6  ;;  %v2016_v53 = vrot.slane %v2010_v61, 6 }
 0x24a   :  { %v1983_v25 = vadd.f32 %v1979_v43, %v1963_v39  ;;  %v1997_v32 = vsel %vm1438_vm4, %v1995_v17, %v1996_v3  ;;  %v2068_v42 = vmul.f32 %v3773_v33, %v2027_v22  ;;  %v2049_v62 = vmul.f32 %v3766_v31, %v2029_v8 }
 0x24b   :  { %v2069_v59 = vmul.f32 %v3773_v33, %v2029_v8  ;;  %v1999_v40 = vsel %vm1438_vm4, %v1996_v3, %v1998_v35  ;;  %v2002_v2 = vadd.f32 %v1997_v32, %v1982_v10  ;;  %v2017_v48 = vsel %vm1459_vm5, %v2015_v19, %v2016_v53 }
 0x24c   :  { %v2003_v50 = vadd.f32 %v1999_v40, %v1983_v25  ;;  %v2054_v20 = vrot.slane %v2048_v0, 1  ;;  %v2088_v26 = vmul.f32 %v3778_v7, %v2027_v22  ;;  %v2089_v13 = vmul.f32 %v3778_v7, %v2029_v8 }
 0x24d   :  { %v2109_v17 = vmul.f32 %v3784_v49, %v2029_v8  ;;  %v2019_v9 = vsel %vm1459_vm5, %v2016_v53, %v2018_v38  ;;  %v2022_v4 = vadd.f32 %v2017_v48, %v2002_v2  ;;  %v2039_v31 = vmul.f32 %v3799_v28, %v2027_v22  ;;  %v2167_v38 = vpop.permute.xlu1 %2166 }
 0x24e   :  { %v2023_v56 = vadd.f32 %v2019_v9, %v2003_v50  ;;  %v2074_v33 = vrot.slane %v2068_v42, 2  ;;  %v2108_v60 = vmul.f32 %v3784_v49, %v2027_v22  ;;  %v2056_v37 = vrot.slane %v2049_v62, 1 }
 0x24f   :  { %v2129_v6 = vmul.f32 %v3789_v63, %v2029_v8  ;;  %v2040_v24 = vadd.f32 %v3824_v11, %v2022_v4  ;;  %v2128_v16 = vmul.f32 %v3789_v63, %v2027_v22  ;;  %v2149_v7 = vmul.f32 %v3811_v14, %v2029_v8  ;;  %v2426_v11 = vld [vmem:[%s3975_s1 + $0x6] ss:$0 sm:$0xff]  ;;  %v3895_v63 = vpop.permute.xlu0 %2164 }
 0x250   :  { %v2041_v12 = vadd.f32 %v2039_v31, %v2023_v56  ;;  %v2055_v44 = vsel %vm1354_vm0, %v2053_v54, %v2054_v20  ;;  %v2094_v46 = vrot.slane %v2088_v26, 3  ;;  %v2076_v28 = vrot.slane %v2069_v59, 2 }
 0x251   :  { %v2096_v52 = vrot.slane %v2089_v13, 3  ;;  %v2057_v49 = vsel %vm1354_vm0, %v2054_v20, %v2056_v37  ;;  %v2060_v41 = vadd.f32 %v2055_v44, %v2040_v24  ;;  %v2075_v55 = vsel %vm1375_vm1, %v2073_v34, %v2074_v33 }
 0x252   :  { %v2061_v29 = vadd.f32 %v2057_v49, %v2041_v12  ;;  %v2114_v54 = vrot.slane %v2108_v60, 4  ;;  %v2148_v61 = vmul.f32 %v3811_v14, %v2027_v22  ;;  %v2116_v23 = vrot.slane %v2109_v17, 4  ;;  %v2427_v14 = vld [vmem:[%s3975_s1 + $0xd] ss:$0 sm:$0xff] }
 0x253   :  { %v2077_v19 = vsel %vm1375_vm1, %v2074_v33, %v2076_v28  ;;  %v2080_v51 = vadd.f32 %v2075_v55, %v2060_v41  ;;  %v2134_v45 = vrot.slane %v2128_v16, 5  ;;  %v2136_v35 = vrot.slane %v2129_v6, 5  ;;  %v2431_v16 = vld [vmem:[%s3975_s1 + $0x29] ss:$0 sm:$0xff] }
 0x254   :  { %v2156_v8 = vrot.slane %v2149_v7, 6  ;;  %v2081_v39 = vadd.f32 %v2077_v19, %v2061_v29  ;;  %v2095_v15 = vsel %vm1396_vm2, %v2093_v1, %v2094_v46  ;;  %v2177_v3 = vmul.f32 %v2426_v11, %v3895_v63  ;;  %v2428_v1 = vld [vmem:[%s3975_s1 + $0x14] ss:$0 sm:$0xff] }
 0x255   :  { %v2097_v30 = vsel %vm1396_vm2, %v2094_v46, %v2096_v52  ;;  %v2100_v34 = vadd.f32 %v2095_v15, %v2080_v51  ;;  %v2176_v0 = vmul.f32 %v2426_v11, %v3889_v57  ;;  %v2115_v43 = vsel %vm1417_vm3, %v2113_v21, %v2114_v54  ;;  %v2430_v21 = vld [vmem:[%s3975_s1 + $0x22] ss:$0 sm:$0xff]  ;;  %v2432_v52 = vld [vmem:[%s3975_s1 + $0x30] ss:$0 sm:$0xff]  ;;  %s2484_s1 = smov 96  }
 0x256   :  { %v2101_v22 = vadd.f32 %v2097_v30, %v2081_v39  ;;  %v2154_v10 = vrot.slane %v2148_v61, 6  ;;  %v2185_v27 = vmul.f32 %v2427_v14, %v3889_v57  ;;  %v2117_v25 = vsel %vm1417_vm3, %v2114_v54, %v2116_v23 }
 0x257   :  { %v2120_v32 = vadd.f32 %v2115_v43, %v2100_v34  ;;  %v2135_v53 = vsel %vm1438_vm4, %v2133_v18, %v2134_v45  ;;  %v2205_v42 = vmul.f32 %v2428_v1, %v3889_v57  ;;  %v2225_v59 = vmul.f32 %v2429_v5, %v3889_v57 }
 0x258   :  { %v2121_v62 = vadd.f32 %v2117_v25, %v2101_v22  ;;  %v2245_v40 = vmul.f32 %v2430_v21, %v3889_v57  ;;  %v2186_v2 = vmul.f32 %v2427_v14, %v3895_v63  ;;  %v2137_v58 = vsel %vm1438_vm4, %v2134_v45, %v2136_v35 }
 0x259   :  { %v2140_v18 = vadd.f32 %v2135_v53, %v2120_v32  ;;  %v2187_v50 = vmul.f32 %v2427_v14, %v2167_v38  ;;  %v2206_v48 = vmul.f32 %v2428_v1, %v3895_v63  ;;  %v2155_v26 = vsel %vm1459_vm5, %v2153_v47, %v2154_v10 }
 0x25a   :  { %v2141_v20 = vadd.f32 %v2137_v58, %v2121_v62  ;;  %v2191_v13 = vrot.slane %v2185_v27, 1  ;;  %v2207_v17 = vmul.f32 %v2428_v1, %v2167_v38  ;;  %v2157_v9 = vsel %vm1459_vm5, %v2154_v10, %v2156_v8 }
 0x25b   :  { %v2160_v4 = vadd.f32 %v2155_v26, %v2140_v18  ;;  %v2226_v56 = vmul.f32 %v2429_v5, %v3895_v63  ;;  %v2227_v31 = vmul.f32 %v2429_v5, %v2167_v38  ;;  %v2211_v33 = vrot.slane %v2205_v42, 2 }
 0x25c   :  { %v2231_v60 = vrot.slane %v2225_v59, 3  ;;  %v2251_v37 = vrot.slane %v2245_v40, 4  ;;  %v2192_v6 = vrot.slane %v2186_v2, 1  ;;  %v2194_v36 = vrot.slane %v2187_v50, 1 }
 0x25d   :  { %v2178_v24 = vadd.f32 %v2176_v0, %v2160_v4  ;;  %v2212_v7 = vrot.slane %v2206_v48, 2  ;;  %v2246_v47 = vmul.f32 %v2430_v21, %v3895_v63  ;;  %v2214_v12 = vrot.slane %v2207_v17, 2 }
 0x25e   :  { %v2193_v44 = vsel %vm1354_vm0, %v2191_v13, %v2192_v6  ;;  %v2265_v46 = vmul.f32 %v2431_v16, %v3889_v57  ;;  %v2161_v28 = vadd.f32 %v2157_v9, %v2141_v20  ;;  %v2232_v49 = vrot.slane %v2226_v56, 3 }
 0x25f   :  { %v2234_v41 = vrot.slane %v2227_v31, 3  ;;  %v2247_v11 = vmul.f32 %v2430_v21, %v2167_v38  ;;  %v2198_v29 = vadd.f32 %v2193_v44, %v2178_v24  ;;  %v2213_v55 = vsel %vm1375_vm1, %v2211_v33, %v2212_v7 }
 0x260   :  { %v2266_v54 = vmul.f32 %v2431_v16, %v3895_v63  ;;  %v2285_v61 = vmul.f32 %v2432_v52, %v3889_v57  ;;  %v2179_v23 = vadd.f32 %v2177_v3, %v2161_v28  ;;  %v2195_v19 = vsel %vm1354_vm0, %v2192_v6, %v2194_v36 }
 0x261   :  { %v2252_v51 = vrot.slane %v2246_v47, 4  ;;  %v2267_v45 = vmul.f32 %v2431_v16, %v2167_v38  ;;  %v2218_v35 = vadd.f32 %v2213_v55, %v2198_v29  ;;  %v2233_v8 = vsel %vm1396_vm2, %v2231_v60, %v2232_v49 }
 0x262   :  { %v2271_v39 = vrot.slane %v2265_v46, 5  ;;  %v2286_v15 = vmul.f32 %v2432_v52, %v3895_v63  ;;  %v2199_v30 = vadd.f32 %v2195_v19, %v2179_v23  ;;  %v2254_v34 = vrot.slane %v2247_v11, 4 }
 0x263   :  { %v2287_v0 = vmul.f32 %v2432_v52, %v2167_v38  ;;  %v2238_v14 = vadd.f32 %v2233_v8, %v2218_v35  ;;  %v2215_v22 = vsel %vm1375_vm1, %v2212_v7, %v2214_v12  ;;  %v2253_v43 = vsel %vm1417_vm3, %v2251_v37, %v2252_v51 }
 0x264   :  { %v2272_v57 = vrot.slane %v2266_v54, 5  ;;  %v2291_v3 = vrot.slane %v2285_v61, 6  ;;  %v2219_v10 = vadd.f32 %v2215_v22, %v2199_v30  ;;  %v2274_v27 = vrot.slane %v2267_v45, 5 }
 0x265   :  { %v2258_v1 = vadd.f32 %v2253_v43, %v2238_v14  ;;  %v2235_v25 = vsel %vm1396_vm2, %v2232_v49, %v2234_v41  ;;  %v2292_v53 = vrot.slane %v2286_v15, 6  ;;  %v2294_v63 = vrot.slane %v2287_v0, 6 }
 0x266   :  { %v2273_v32 = vsel %vm1438_vm4, %v2271_v39, %v2272_v57  ;;  %v2239_v42 = vadd.f32 %v2235_v25, %v2219_v10  ;;  %v2255_v38 = vsel %vm1417_vm3, %v2252_v51, %v2254_v34  ;;  %v2275_v40 = vsel %vm1438_vm4, %v2272_v57, %v2274_v27 }
 0x267   :  { %v2278_v5 = vadd.f32 %v2273_v32, %v2258_v1  ;;  %v2293_v21 = vsel %vm1459_vm5, %v2291_v3, %v2292_v53  ;;  %v2295_v58 = vsel %vm1459_vm5, %v2292_v53, %v2294_v63 }
 0x268   :  { %v2259_v62 = vadd.f32 %v2255_v38, %v2239_v42 }
 0x269   :  { %v2298_v59 = vadd.f32 %v2293_v21, %v2278_v5 }
 0x26a   :  { %v2279_v2 = vadd.f32 %v2275_v40, %v2259_v62 }
 0x26b   :  { %2302 = vrot.lane.b32.xlu0 %v2298_v59, %s2484_s1 }
 0x26c   :  { %v2299_v18 = vadd.f32 %v2295_v58, %v2279_v2 }
 0x26e   :  { %2304 = vrot.lane.b32.xlu1 %v2299_v18, %s2484_s1 }
 0x2dd   :  { %v2303_v50 = vpop.permute.xlu0 %2302 }
 0x2de   :  { %v2308_v48 = vadd.f32 %v2303_v50, %v2298_v59 }
 0x2e0   :  { %v2310_v20 = vsub.f32 0.0, %v2308_v48  ;;  %v2305_v26 = vpop.permute.xlu1 %2304 }
 0x2e1   :  { %v2309_v13 = vadd.f32 %v2305_v26, %v2299_v18 }
 0x2e2   :  { %v2312_v17 = vmul.f32 1.442695, %v2310_v20 }
 0x2e3   :  { %v2311_v9 = vsub.f32 0.0, %v2309_v13 }
 0x2e4   :  { %2445 = vpow2.f32 %v2312_v17 }
 0x2e5   :  { %v2314_v4 = vmul.f32 1.442695, %v2311_v9 }
 0x2e7   :  { %2447 = vpow2.f32 %v2314_v4 }
 0x2ee   :  { %v2446_v56 = vpop.eup %2445 }
 0x2ef   :  { %v2316_v31 = vadd.f32 1.0, %v2446_v56 }
 0x2f1   :  { %v2448_v33 = vpop.eup %2447  ;;  %2449 = vrcp.f32 %v2316_v31 }
 0x2f2   :  { %v2317_v60 = vadd.f32 1.0, %v2448_v33 }
 0x2f4   :  { %2451 = vrcp.f32 %v2317_v60 }
 0x2fb   :  { %v2450_v37 = vpop.eup %2449 }
 0x2fc   :  { %2327 = vrot.lane.b32.xlu0 %v2450_v37, %s2485_s13  ;;  %2323 = vst.msk [vmem:[#allocation3] sm:$0xff] %vm2322_vm6, %v2450_v37 }
 0x2fe   :  { %v2452_v6 = vpop.eup %2451 }
 0x2ff   :  { %2329 = vrot.lane.b32.xlu1 %v2452_v6, %s2485_s13  ;;  %2324 = vst.msk [vmem:[#allocation3 + $0x8] sm:$0xff] %vm2322_vm6, %v2452_v6 }
 0x36e   :  { %v2328_v24 = vpop.permute.xlu0 %2327 }
 0x36f   :  { %2334 = vst.msk [vmem:[#allocation3 + $0x10] sm:$0xff] %vm2322_vm6, %v2328_v24 }
 0x371   :  { %v2330_v16 = vpop.permute.xlu1 %2329 }
 0x372   :  { %2335 = vst.msk [vmem:[#allocation3 + $0x18] sm:$0xff] %vm2322_vm6, %v2330_v16 }
 0x373   :  { %2464 = shalt.err (!%p2461_p4)
}
 0x374   :  { %s2465_s19 = scalar_lea.hbm %s3976_s2, 512 }
 0x375   :  { %p2466_p5 = scmp.ne.s32.totalorder %s3976_s2, %s2465_s19  ;;  %p2469_p6 = scmp.lt.u32.totalorder %s2465_s19, %s3976_s2 }
 0x377   :  { %p2471_p7 = pnand %p2469_p6, %p2466_p5 }
 0x379   :  { %2474 = shalt.err (!%p2471_p7)
}
 0x37a   :  { %s2487_s24 = smov 128   ;;  %s2488_s0 = smov 8  }
 0x37b   :  { %2347 = dma.vmem_to_hbm [thread:$0]  %s2342_s15, 512, %s3976_s2, [#allocation4], %s2487_s24, %s2487_s24, %s2488_s0  }
 0x37c   :  { %2475 = dma.done.wait [#allocation4], 512  }
 0x37d   :  { %2476 = vsyncadd [#allocation4], 4294966784 }
 0x37e   :  { %2351 = vsyncpa [#allocation4], 1 }

</bundles_post_ra>
